<compile_context>
chip_gen: v5e
topology: v5e:2x2
jax: 0.10.0
libtpu: 0.0.40
codegen_flags: <defaults>
</compile_context>

<pallas_src>
import functools

import jax
import jax.numpy as jnp
import numpy as np
from jax import lax
from jax.experimental import pallas as pl
from jax.experimental.pallas import tpu as pltpu  # noqa: F401  (kept for parity / future tiling)


def lstm_fc_kernel(x_ref, wih_ref, whh_ref, b_ref, wfc_ref, bfc_ref, out_ref, *, T, Bp):
    """Whole sequence in one invocation; all operands are full VMEM blocks.

    x_ref:   (T*Bp, H)   time-major, batch-padded, pre-flattened input
    wih_ref: (4, H, H)   per-gate W_ih^T   (gate order i, f, g, o)
    whh_ref: (4, H, H)   per-gate W_hh^T
    b_ref:   (4, 1, H)   per-gate (b_ih + b_hh)
    wfc_ref: (H, H)      fc weight^T
    bfc_ref: (1, H)      fc bias
    out_ref: (Bp, H)     fc(last hidden state), padded batch
    """
    H = x_ref.shape[-1]
    x = x_ref[...]  # (T*Bp, H), f32

    # --- Hoisted input projection: 4 per-gate matmuls, completely off the serial path. ---
    # gx[k]: (T*Bp, H); rows t*Bp:(t+1)*Bp are timestep t (sublane-tile aligned, Bp == 8).
    gx = [jnp.dot(x, wih_ref[k], preferred_element_type=jnp.float32) + b_ref[k]
          for k in range(4)]

    # Hoist the recurrent weight loads out of the loop.
    whh = [whh_ref[k] for k in range(4)]

    h = jnp.zeros((Bp, H), jnp.float32)
    c = jnp.zeros((Bp, H), jnp.float32)

    def sig(v):
        # Single EUP op instead of exp + reciprocal (exact identity).
        return 0.5 * jnp.tanh(0.5 * v) + 0.5

    # --- Serial recurrence: per step only h @ W_hh_gate + elementwise gate math. ---
    # Static unroll (T is small & compile-time constant); all slices are static and
    # aligned to 8-row sublane tiles, so there is no XLU work inside the loop.
    for t in range(T):
        r0 = t * Bp
        i_g = sig(gx[0][r0:r0 + Bp, :] + jnp.dot(h, whh[0], preferred_element_type=jnp.float32))
        f_g = sig(gx[1][r0:r0 + Bp, :] + jnp.dot(h, whh[1], preferred_element_type=jnp.float32))
        g_g = jnp.tanh(gx[2][r0:r0 + Bp, :] + jnp.dot(h, whh[2], preferred_element_type=jnp.float32))
        o_g = sig(gx[3][r0:r0 + Bp, :] + jnp.dot(h, whh[3], preferred_element_type=jnp.float32))
        c = f_g * c + i_g * g_g
        h = o_g * jnp.tanh(c)

    # --- FC on the last hidden state; plain 2-D store (masked vst at toy H is accepted). ---
    y = jnp.dot(h, wfc_ref[...], preferred_element_type=jnp.float32) + bfc_ref[...]
    out_ref[...] = y.astype(out_ref.dtype)


def language_decoder_forward(x, params):
    """x: (B, T, H) float32 (batch_first); params: PyTorch-convention LSTM + fc weights."""
    B, T, H = x.shape
    Bp = ((B + 7) // 8) * 8  # pad batch to one sublane tile

    # All layout plumbing lives in the wrapper (XLA ops on tiny arrays), so the kernel never
    # reshapes: time-major, batch-padded, flattened (T*Bp, H).
    x_tm = jnp.transpose(x, (1, 0, 2))                       # (T, B, H)
    x_tm = jnp.pad(x_tm, ((0, 0), (0, Bp - B), (0, 0)))      # (T, Bp, H), zero pad rows
    x_flat = x_tm.reshape(T * Bp, H)                         # (T*Bp, H)

    # Per-gate weight split (PyTorch gate order i, f, g, o), transposed for y = x @ W^T.
    W_ih = params["weight_ih"]                               # (4H, H)
    W_hh = params["weight_hh"]                               # (4H, H)
    b = params["bias_ih"] + params["bias_hh"]                # (4H,)
    wih_g = jnp.stack([W_ih[k * H:(k + 1) * H].T for k in range(4)])           # (4, H, H)
    whh_g = jnp.stack([W_hh[k * H:(k + 1) * H].T for k in range(4)])           # (4, H, H)
    b_g = jnp.stack([b[k * H:(k + 1) * H].reshape(1, H) for k in range(4)])    # (4, 1, H)

    wfc_t = params["fc_weight"].T                            # (H, H)
    bfc = params["fc_bias"].reshape(1, H)                    # (1, H)

    y = pl.pallas_call(
        functools.partial(lstm_fc_kernel, T=T, Bp=Bp),
        out_shape=jax.ShapeDtypeStruct((Bp, H), x.dtype),
        # Gridless: every operand is a single whole-array VMEM block (a few tens of KiB here,
        # far under the scoped VMEM limit).  See header notes for the production-scale plan.
    )(x_flat, wih_g, whh_g, b_g, wfc_t, bfc)

    # Drop batch padding; unsqueeze(1) is free layout plumbing in the wrapper.
    return y[:B, None, :]


def language_decoder_reference(x, params):
    """Pure-JAX reference mirroring torch.nn.LSTM + nn.Linear semantics."""
    B, T, H = x.shape
    wih_t = params["weight_ih"].T
    whh_t = params["weight_hh"].T
    b = params["bias_ih"] + params["bias_hh"]

    def step(carry, x_t):
        h, c = carry
        gates = x_t @ wih_t + h @ whh_t + b
        i = jax.nn.sigmoid(gates[:, 0:H])
        f = jax.nn.sigmoid(gates[:, H:2 * H])
        g = jnp.tanh(gates[:, 2 * H:3 * H])
        o = jax.nn.sigmoid(gates[:, 3 * H:4 * H])
        c = f * c + i * g
        h = o * jnp.tanh(c)
        return (h, c), h

    h0 = jnp.zeros((B, H), jnp.float32)
    c0 = jnp.zeros((B, H), jnp.float32)
    (h_last, _), _ = lax.scan(step, (h0, c0), jnp.transpose(x, (1, 0, 2)))
    y = h_last @ params["fc_weight"].T + params["fc_bias"]
    return y[:, None, :]


def init_params(key, hidden_size):
    """Deterministic init with PyTorch-style U(-1/sqrt(H), 1/sqrt(H))."""
    H = hidden_size
    k = 1.0 / np.sqrt(H)
    keys = jax.random.split(key, 6)
    u = lambda kk, shape: jax.random.uniform(kk, shape, jnp.float32, -k, k)
    return {
        "weight_ih": u(keys[0], (4 * H, H)),
        "weight_hh": u(keys[1], (4 * H, H)),
        "bias_ih": u(keys[2], (4 * H,)),
        "bias_hh": u(keys[3], (4 * H,)),
        "fc_weight": u(keys[4], (H, H)),
        "fc_bias": u(keys[5], (H,)),
    }


if __name__ == "__main__":
    B, T, H = 2, 8, 32                      # batch, seq, HIDDEN_SIZE (= feature_size)
    root = jax.random.PRNGKey(0)
    k_x, k_p = jax.random.split(root)

    x = jax.random.normal(k_x, (B, T, H), jnp.float32)   # visual_embedding (B, T, H)
    params = init_params(k_p, H)

    out = language_decoder_forward(x, params)
    out = jax.block_until_ready(out)

    ref = language_decoder_reference(x, params)
    assert out.shape == (B, 1, H)
    np.testing.assert_allclose(np.asarray(out), np.asarray(ref), rtol=1e-5, atol=1e-5)

    print("KERNEL_OK")
</pallas_src>

<mosaic_0001>
module attributes {stable_mosaic.version = 11 : i64} {
  func.func @lstm_fc_kernel(%arg0: memref<64x32xf32, #tpu.memory_space<vmem>>, %arg1: memref<4x32x32xf32, #tpu.memory_space<vmem>>, %arg2: memref<4x32x32xf32, #tpu.memory_space<vmem>>, %arg3: memref<4x1x32xf32, #tpu.memory_space<vmem>>, %arg4: memref<32x32xf32, #tpu.memory_space<vmem>>, %arg5: memref<1x32xf32, #tpu.memory_space<vmem>>, %arg6: memref<8x32xf32, #tpu.memory_space<vmem>>) attributes {dimension_semantics = [], scalar_prefetch = 0 : i64, scratch_operands = 0 : i64, tpu.core_type = #tpu.core_type<tc>} {
    %c0 = arith.constant 0 : index
    %c0_0 = arith.constant 0 : index
    %0 = vector.load %arg0[%c0, %c0_0] : memref<64x32xf32, #tpu.memory_space<vmem>>, vector<64x32xf32>
    %c0_1 = arith.constant 0 : index
    %c0_2 = arith.constant 0 : index
    %c0_3 = arith.constant 0 : index
    %1 = vector.load %arg1[%c0_1, %c0_2, %c0_3] : memref<4x32x32xf32, #tpu.memory_space<vmem>>, vector<1x32x32xf32>
    %2 = vector.shape_cast %1 : vector<1x32x32xf32> to vector<32x32xf32>
    %cst = arith.constant dense<0.000000e+00> : vector<64x32xf32>
    %3 = tpu.matmul %0, %2, %cst {dimension_numbers = #tpu.dot_dimension_numbers<[1], [0], [0], [1], [0, 0, 1, 1], [], []>} : vector<64x32xf32>, vector<32x32xf32>, vector<64x32xf32> -> vector<64x32xf32>
    %c0_4 = arith.constant 0 : index
    %c0_5 = arith.constant 0 : index
    %c0_6 = arith.constant 0 : index
    %4 = vector.load %arg3[%c0_4, %c0_5, %c0_6] : memref<4x1x32xf32, #tpu.memory_space<vmem>>, vector<1x1x32xf32>
    %5 = vector.shape_cast %4 : vector<1x1x32xf32> to vector<1x32xf32>
    %6 = vector.broadcast %5 : vector<1x32xf32> to vector<64x32xf32>
    %7 = arith.addf %3, %6 : vector<64x32xf32>
    %c1 = arith.constant 1 : index
    %c0_7 = arith.constant 0 : index
    %c0_8 = arith.constant 0 : index
    %8 = vector.load %arg1[%c1, %c0_7, %c0_8] : memref<4x32x32xf32, #tpu.memory_space<vmem>>, vector<1x32x32xf32>
    %9 = vector.shape_cast %8 : vector<1x32x32xf32> to vector<32x32xf32>
    %cst_9 = arith.constant dense<0.000000e+00> : vector<64x32xf32>
    %10 = tpu.matmul %0, %9, %cst_9 {dimension_numbers = #tpu.dot_dimension_numbers<[1], [0], [0], [1], [0, 0, 1, 1], [], []>} : vector<64x32xf32>, vector<32x32xf32>, vector<64x32xf32> -> vector<64x32xf32>
    %c1_10 = arith.constant 1 : index
    %c0_11 = arith.constant 0 : index
    %c0_12 = arith.constant 0 : index
    %11 = vector.load %arg3[%c1_10, %c0_11, %c0_12] : memref<4x1x32xf32, #tpu.memory_space<vmem>>, vector<1x1x32xf32>
    %12 = vector.shape_cast %11 : vector<1x1x32xf32> to vector<1x32xf32>
    %13 = vector.broadcast %12 : vector<1x32xf32> to vector<64x32xf32>
    %14 = arith.addf %10, %13 : vector<64x32xf32>
    %c2 = arith.constant 2 : index
    %c0_13 = arith.constant 0 : index
    %c0_14 = arith.constant 0 : index
    %15 = vector.load %arg1[%c2, %c0_13, %c0_14] : memref<4x32x32xf32, #tpu.memory_space<vmem>>, vector<1x32x32xf32>
    %16 = vector.shape_cast %15 : vector<1x32x32xf32> to vector<32x32xf32>
    %cst_15 = arith.constant dense<0.000000e+00> : vector<64x32xf32>
    %17 = tpu.matmul %0, %16, %cst_15 {dimension_numbers = #tpu.dot_dimension_numbers<[1], [0], [0], [1], [0, 0, 1, 1], [], []>} : vector<64x32xf32>, vector<32x32xf32>, vector<64x32xf32> -> vector<64x32xf32>
    %c2_16 = arith.constant 2 : index
    %c0_17 = arith.constant 0 : index
    %c0_18 = arith.constant 0 : index
    %18 = vector.load %arg3[%c2_16, %c0_17, %c0_18] : memref<4x1x32xf32, #tpu.memory_space<vmem>>, vector<1x1x32xf32>
    %19 = vector.shape_cast %18 : vector<1x1x32xf32> to vector<1x32xf32>
    %20 = vector.broadcast %19 : vector<1x32xf32> to vector<64x32xf32>
    %21 = arith.addf %17, %20 : vector<64x32xf32>
    %c3 = arith.constant 3 : index
    %c0_19 = arith.constant 0 : index
    %c0_20 = arith.constant 0 : index
    %22 = vector.load %arg1[%c3, %c0_19, %c0_20] : memref<4x32x32xf32, #tpu.memory_space<vmem>>, vector<1x32x32xf32>
    %23 = vector.shape_cast %22 : vector<1x32x32xf32> to vector<32x32xf32>
    %cst_21 = arith.constant dense<0.000000e+00> : vector<64x32xf32>
    %24 = tpu.matmul %0, %23, %cst_21 {dimension_numbers = #tpu.dot_dimension_numbers<[1], [0], [0], [1], [0, 0, 1, 1], [], []>} : vector<64x32xf32>, vector<32x32xf32>, vector<64x32xf32> -> vector<64x32xf32>
    %c3_22 = arith.constant 3 : index
    %c0_23 = arith.constant 0 : index
    %c0_24 = arith.constant 0 : index
    %25 = vector.load %arg3[%c3_22, %c0_23, %c0_24] : memref<4x1x32xf32, #tpu.memory_space<vmem>>, vector<1x1x32xf32>
    %26 = vector.shape_cast %25 : vector<1x1x32xf32> to vector<1x32xf32>
    %27 = vector.broadcast %26 : vector<1x32xf32> to vector<64x32xf32>
    %28 = arith.addf %24, %27 : vector<64x32xf32>
    %c0_25 = arith.constant 0 : index
    %c0_26 = arith.constant 0 : index
    %c0_27 = arith.constant 0 : index
    %29 = vector.load %arg2[%c0_25, %c0_26, %c0_27] : memref<4x32x32xf32, #tpu.memory_space<vmem>>, vector<1x32x32xf32>
    %30 = vector.shape_cast %29 : vector<1x32x32xf32> to vector<32x32xf32>
    %c1_28 = arith.constant 1 : index
    %c0_29 = arith.constant 0 : index
    %c0_30 = arith.constant 0 : index
    %31 = vector.load %arg2[%c1_28, %c0_29, %c0_30] : memref<4x32x32xf32, #tpu.memory_space<vmem>>, vector<1x32x32xf32>
    %32 = vector.shape_cast %31 : vector<1x32x32xf32> to vector<32x32xf32>
    %c2_31 = arith.constant 2 : index
    %c0_32 = arith.constant 0 : index
    %c0_33 = arith.constant 0 : index
    %33 = vector.load %arg2[%c2_31, %c0_32, %c0_33] : memref<4x32x32xf32, #tpu.memory_space<vmem>>, vector<1x32x32xf32>
    %34 = vector.shape_cast %33 : vector<1x32x32xf32> to vector<32x32xf32>
    %c3_34 = arith.constant 3 : index
    %c0_35 = arith.constant 0 : index
    %c0_36 = arith.constant 0 : index
    %35 = vector.load %arg2[%c3_34, %c0_35, %c0_36] : memref<4x32x32xf32, #tpu.memory_space<vmem>>, vector<1x32x32xf32>
    %36 = vector.shape_cast %35 : vector<1x32x32xf32> to vector<32x32xf32>
    %cst_37 = arith.constant 0.000000e+00 : f32
    %37 = vector.broadcast %cst_37 : f32 to vector<8x32xf32>
    %cst_38 = arith.constant 0.000000e+00 : f32
    %38 = vector.broadcast %cst_38 : f32 to vector<8x32xf32>
    %39 = vector.extract_strided_slice %7 {offsets = [0, 0], sizes = [8, 32], strides = [1, 1]} : vector<64x32xf32> to vector<8x32xf32>
    %cst_39 = arith.constant dense<0.000000e+00> : vector<8x32xf32>
    %40 = tpu.matmul %37, %30, %cst_39 {dimension_numbers = #tpu.dot_dimension_numbers<[1], [0], [0], [1], [0, 0, 1, 1], [], []>} : vector<8x32xf32>, vector<32x32xf32>, vector<8x32xf32> -> vector<8x32xf32>
    %41 = arith.addf %39, %40 : vector<8x32xf32>
    %cst_40 = arith.constant 5.000000e-01 : f32
    %42 = vector.broadcast %cst_40 : f32 to vector<8x32xf32>
    %43 = arith.mulf %42, %41 : vector<8x32xf32>
    %44 = math.tanh %43 : vector<8x32xf32>
    %cst_41 = arith.constant 5.000000e-01 : f32
    %45 = vector.broadcast %cst_41 : f32 to vector<8x32xf32>
    %46 = arith.mulf %45, %44 : vector<8x32xf32>
    %cst_42 = arith.constant 5.000000e-01 : f32
    %47 = vector.broadcast %cst_42 : f32 to vector<8x32xf32>
    %48 = arith.addf %46, %47 : vector<8x32xf32>
    %49 = vector.extract_strided_slice %14 {offsets = [0, 0], sizes = [8, 32], strides = [1, 1]} : vector<64x32xf32> to vector<8x32xf32>
    %cst_43 = arith.constant dense<0.000000e+00> : vector<8x32xf32>
    %50 = tpu.matmul %37, %32, %cst_43 {dimension_numbers = #tpu.dot_dimension_numbers<[1], [0], [0], [1], [0, 0, 1, 1], [], []>} : vector<8x32xf32>, vector<32x32xf32>, vector<8x32xf32> -> vector<8x32xf32>
    %51 = arith.addf %49, %50 : vector<8x32xf32>
    %cst_44 = arith.constant 5.000000e-01 : f32
    %52 = vector.broadcast %cst_44 : f32 to vector<8x32xf32>
    %53 = arith.mulf %52, %51 : vector<8x32xf32>
    %54 = math.tanh %53 : vector<8x32xf32>
    %cst_45 = arith.constant 5.000000e-01 : f32
    %55 = vector.broadcast %cst_45 : f32 to vector<8x32xf32>
    %56 = arith.mulf %55, %54 : vector<8x32xf32>
    %cst_46 = arith.constant 5.000000e-01 : f32
    %57 = vector.broadcast %cst_46 : f32 to vector<8x32xf32>
    %58 = arith.addf %56, %57 : vector<8x32xf32>
    %59 = vector.extract_strided_slice %21 {offsets = [0, 0], sizes = [8, 32], strides = [1, 1]} : vector<64x32xf32> to vector<8x32xf32>
    %cst_47 = arith.constant dense<0.000000e+00> : vector<8x32xf32>
    %60 = tpu.matmul %37, %34, %cst_47 {dimension_numbers = #tpu.dot_dimension_numbers<[1], [0], [0], [1], [0, 0, 1, 1], [], []>} : vector<8x32xf32>, vector<32x32xf32>, vector<8x32xf32> -> vector<8x32xf32>
    %61 = arith.addf %59, %60 : vector<8x32xf32>
    %62 = math.tanh %61 : vector<8x32xf32>
    %63 = vector.extract_strided_slice %28 {offsets = [0, 0], sizes = [8, 32], strides = [1, 1]} : vector<64x32xf32> to vector<8x32xf32>
    %cst_48 = arith.constant dense<0.000000e+00> : vector<8x32xf32>
    %64 = tpu.matmul %37, %36, %cst_48 {dimension_numbers = #tpu.dot_dimension_numbers<[1], [0], [0], [1], [0, 0, 1, 1], [], []>} : vector<8x32xf32>, vector<32x32xf32>, vector<8x32xf32> -> vector<8x32xf32>
    %65 = arith.addf %63, %64 : vector<8x32xf32>
    %cst_49 = arith.constant 5.000000e-01 : f32
    %66 = vector.broadcast %cst_49 : f32 to vector<8x32xf32>
    %67 = arith.mulf %66, %65 : vector<8x32xf32>
    %68 = math.tanh %67 : vector<8x32xf32>
    %cst_50 = arith.constant 5.000000e-01 : f32
    %69 = vector.broadcast %cst_50 : f32 to vector<8x32xf32>
    %70 = arith.mulf %69, %68 : vector<8x32xf32>
    %cst_51 = arith.constant 5.000000e-01 : f32
    %71 = vector.broadcast %cst_51 : f32 to vector<8x32xf32>
    %72 = arith.addf %70, %71 : vector<8x32xf32>
    %73 = arith.mulf %58, %38 : vector<8x32xf32>
    %74 = arith.mulf %48, %62 : vector<8x32xf32>
    %75 = arith.addf %73, %74 : vector<8x32xf32>
    %76 = math.tanh %75 : vector<8x32xf32>
    %77 = arith.mulf %72, %76 : vector<8x32xf32>
    %78 = vector.extract_strided_slice %7 {offsets = [8, 0], sizes = [8, 32], strides = [1, 1]} : vector<64x32xf32> to vector<8x32xf32>
    %cst_52 = arith.constant dense<0.000000e+00> : vector<8x32xf32>
    %79 = tpu.matmul %77, %30, %cst_52 {dimension_numbers = #tpu.dot_dimension_numbers<[1], [0], [0], [1], [0, 0, 1, 1], [], []>} : vector<8x32xf32>, vector<32x32xf32>, vector<8x32xf32> -> vector<8x32xf32>
    %80 = arith.addf %78, %79 : vector<8x32xf32>
    %cst_53 = arith.constant 5.000000e-01 : f32
    %81 = vector.broadcast %cst_53 : f32 to vector<8x32xf32>
    %82 = arith.mulf %81, %80 : vector<8x32xf32>
    %83 = math.tanh %82 : vector<8x32xf32>
    %cst_54 = arith.constant 5.000000e-01 : f32
    %84 = vector.broadcast %cst_54 : f32 to vector<8x32xf32>
    %85 = arith.mulf %84, %83 : vector<8x32xf32>
    %cst_55 = arith.constant 5.000000e-01 : f32
    %86 = vector.broadcast %cst_55 : f32 to vector<8x32xf32>
    %87 = arith.addf %85, %86 : vector<8x32xf32>
    %88 = vector.extract_strided_slice %14 {offsets = [8, 0], sizes = [8, 32], strides = [1, 1]} : vector<64x32xf32> to vector<8x32xf32>
    %cst_56 = arith.constant dense<0.000000e+00> : vector<8x32xf32>
    %89 = tpu.matmul %77, %32, %cst_56 {dimension_numbers = #tpu.dot_dimension_numbers<[1], [0], [0], [1], [0, 0, 1, 1], [], []>} : vector<8x32xf32>, vector<32x32xf32>, vector<8x32xf32> -> vector<8x32xf32>
    %90 = arith.addf %88, %89 : vector<8x32xf32>
    %cst_57 = arith.constant 5.000000e-01 : f32
    %91 = vector.broadcast %cst_57 : f32 to vector<8x32xf32>
    %92 = arith.mulf %91, %90 : vector<8x32xf32>
    %93 = math.tanh %92 : vector<8x32xf32>
    %cst_58 = arith.constant 5.000000e-01 : f32
    %94 = vector.broadcast %cst_58 : f32 to vector<8x32xf32>
    %95 = arith.mulf %94, %93 : vector<8x32xf32>
    %cst_59 = arith.constant 5.000000e-01 : f32
    %96 = vector.broadcast %cst_59 : f32 to vector<8x32xf32>
    %97 = arith.addf %95, %96 : vector<8x32xf32>
    %98 = vector.extract_strided_slice %21 {offsets = [8, 0], sizes = [8, 32], strides = [1, 1]} : vector<64x32xf32> to vector<8x32xf32>
    %cst_60 = arith.constant dense<0.000000e+00> : vector<8x32xf32>
    %99 = tpu.matmul %77, %34, %cst_60 {dimension_numbers = #tpu.dot_dimension_numbers<[1], [0], [0], [1], [0, 0, 1, 1], [], []>} : vector<8x32xf32>, vector<32x32xf32>, vector<8x32xf32> -> vector<8x32xf32>
    %100 = arith.addf %98, %99 : vector<8x32xf32>
    %101 = math.tanh %100 : vector<8x32xf32>
    %102 = vector.extract_strided_slice %28 {offsets = [8, 0], sizes = [8, 32], strides = [1, 1]} : vector<64x32xf32> to vector<8x32xf32>
    %cst_61 = arith.constant dense<0.000000e+00> : vector<8x32xf32>
    %103 = tpu.matmul %77, %36, %cst_61 {dimension_numbers = #tpu.dot_dimension_numbers<[1], [0], [0], [1], [0, 0, 1, 1], [], []>} : vector<8x32xf32>, vector<32x32xf32>, vector<8x32xf32> -> vector<8x32xf32>
    %104 = arith.addf %102, %103 : vector<8x32xf32>
    %cst_62 = arith.constant 5.000000e-01 : f32
    %105 = vector.broadcast %cst_62 : f32 to vector<8x32xf32>
    %106 = arith.mulf %105, %104 : vector<8x32xf32>
    %107 = math.tanh %106 : vector<8x32xf32>
    %cst_63 = arith.constant 5.000000e-01 : f32
    %108 = vector.broadcast %cst_63 : f32 to vector<8x32xf32>
    %109 = arith.mulf %108, %107 : vector<8x32xf32>
    %cst_64 = arith.constant 5.000000e-01 : f32
    %110 = vector.broadcast %cst_64 : f32 to vector<8x32xf32>
    %111 = arith.addf %109, %110 : vector<8x32xf32>
    %112 = arith.mulf %97, %75 : vector<8x32xf32>
    %113 = arith.mulf %87, %101 : vector<8x32xf32>
    %114 = arith.addf %112, %113 : vector<8x32xf32>
    %115 = math.tanh %114 : vector<8x32xf32>
    %116 = arith.mulf %111, %115 : vector<8x32xf32>
    %117 = vector.extract_strided_slice %7 {offsets = [16, 0], sizes = [8, 32], strides = [1, 1]} : vector<64x32xf32> to vector<8x32xf32>
    %cst_65 = arith.constant dense<0.000000e+00> : vector<8x32xf32>
    %118 = tpu.matmul %116, %30, %cst_65 {dimension_numbers = #tpu.dot_dimension_numbers<[1], [0], [0], [1], [0, 0, 1, 1], [], []>} : vector<8x32xf32>, vector<32x32xf32>, vector<8x32xf32> -> vector<8x32xf32>
    %119 = arith.addf %117, %118 : vector<8x32xf32>
    %cst_66 = arith.constant 5.000000e-01 : f32
    %120 = vector.broadcast %cst_66 : f32 to vector<8x32xf32>
    %121 = arith.mulf %120, %119 : vector<8x32xf32>
    %122 = math.tanh %121 : vector<8x32xf32>
    %cst_67 = arith.constant 5.000000e-01 : f32
    %123 = vector.broadcast %cst_67 : f32 to vector<8x32xf32>
    %124 = arith.mulf %123, %122 : vector<8x32xf32>
    %cst_68 = arith.constant 5.000000e-01 : f32
    %125 = vector.broadcast %cst_68 : f32 to vector<8x32xf32>
    %126 = arith.addf %124, %125 : vector<8x32xf32>
    %127 = vector.extract_strided_slice %14 {offsets = [16, 0], sizes = [8, 32], strides = [1, 1]} : vector<64x32xf32> to vector<8x32xf32>
    %cst_69 = arith.constant dense<0.000000e+00> : vector<8x32xf32>
    %128 = tpu.matmul %116, %32, %cst_69 {dimension_numbers = #tpu.dot_dimension_numbers<[1], [0], [0], [1], [0, 0, 1, 1], [], []>} : vector<8x32xf32>, vector<32x32xf32>, vector<8x32xf32> -> vector<8x32xf32>
    %129 = arith.addf %127, %128 : vector<8x32xf32>
    %cst_70 = arith.constant 5.000000e-01 : f32
    %130 = vector.broadcast %cst_70 : f32 to vector<8x32xf32>
    %131 = arith.mulf %130, %129 : vector<8x32xf32>
    %132 = math.tanh %131 : vector<8x32xf32>
    %cst_71 = arith.constant 5.000000e-01 : f32
    %133 = vector.broadcast %cst_71 : f32 to vector<8x32xf32>
    %134 = arith.mulf %133, %132 : vector<8x32xf32>
    %cst_72 = arith.constant 5.000000e-01 : f32
    %135 = vector.broadcast %cst_72 : f32 to vector<8x32xf32>
    %136 = arith.addf %134, %135 : vector<8x32xf32>
    %137 = vector.extract_strided_slice %21 {offsets = [16, 0], sizes = [8, 32], strides = [1, 1]} : vector<64x32xf32> to vector<8x32xf32>
    %cst_73 = arith.constant dense<0.000000e+00> : vector<8x32xf32>
    %138 = tpu.matmul %116, %34, %cst_73 {dimension_numbers = #tpu.dot_dimension_numbers<[1], [0], [0], [1], [0, 0, 1, 1], [], []>} : vector<8x32xf32>, vector<32x32xf32>, vector<8x32xf32> -> vector<8x32xf32>
    %139 = arith.addf %137, %138 : vector<8x32xf32>
    %140 = math.tanh %139 : vector<8x32xf32>
    %141 = vector.extract_strided_slice %28 {offsets = [16, 0], sizes = [8, 32], strides = [1, 1]} : vector<64x32xf32> to vector<8x32xf32>
    %cst_74 = arith.constant dense<0.000000e+00> : vector<8x32xf32>
    %142 = tpu.matmul %116, %36, %cst_74 {dimension_numbers = #tpu.dot_dimension_numbers<[1], [0], [0], [1], [0, 0, 1, 1], [], []>} : vector<8x32xf32>, vector<32x32xf32>, vector<8x32xf32> -> vector<8x32xf32>
    %143 = arith.addf %141, %142 : vector<8x32xf32>
    %cst_75 = arith.constant 5.000000e-01 : f32
    %144 = vector.broadcast %cst_75 : f32 to vector<8x32xf32>
    %145 = arith.mulf %144, %143 : vector<8x32xf32>
    %146 = math.tanh %145 : vector<8x32xf32>
    %cst_76 = arith.constant 5.000000e-01 : f32
    %147 = vector.broadcast %cst_76 : f32 to vector<8x32xf32>
    %148 = arith.mulf %147, %146 : vector<8x32xf32>
    %cst_77 = arith.constant 5.000000e-01 : f32
    %149 = vector.broadcast %cst_77 : f32 to vector<8x32xf32>
    %150 = arith.addf %148, %149 : vector<8x32xf32>
    %151 = arith.mulf %136, %114 : vector<8x32xf32>
    %152 = arith.mulf %126, %140 : vector<8x32xf32>
    %153 = arith.addf %151, %152 : vector<8x32xf32>
    %154 = math.tanh %153 : vector<8x32xf32>
    %155 = arith.mulf %150, %154 : vector<8x32xf32>
    %156 = vector.extract_strided_slice %7 {offsets = [24, 0], sizes = [8, 32], strides = [1, 1]} : vector<64x32xf32> to vector<8x32xf32>
    %cst_78 = arith.constant dense<0.000000e+00> : vector<8x32xf32>
    %157 = tpu.matmul %155, %30, %cst_78 {dimension_numbers = #tpu.dot_dimension_numbers<[1], [0], [0], [1], [0, 0, 1, 1], [], []>} : vector<8x32xf32>, vector<32x32xf32>, vector<8x32xf32> -> vector<8x32xf32>
    %158 = arith.addf %156, %157 : vector<8x32xf32>
    %cst_79 = arith.constant 5.000000e-01 : f32
    %159 = vector.broadcast %cst_79 : f32 to vector<8x32xf32>
    %160 = arith.mulf %159, %158 : vector<8x32xf32>
    %161 = math.tanh %160 : vector<8x32xf32>
    %cst_80 = arith.constant 5.000000e-01 : f32
    %162 = vector.broadcast %cst_80 : f32 to vector<8x32xf32>
    %163 = arith.mulf %162, %161 : vector<8x32xf32>
    %cst_81 = arith.constant 5.000000e-01 : f32
    %164 = vector.broadcast %cst_81 : f32 to vector<8x32xf32>
    %165 = arith.addf %163, %164 : vector<8x32xf32>
    %166 = vector.extract_strided_slice %14 {offsets = [24, 0], sizes = [8, 32], strides = [1, 1]} : vector<64x32xf32> to vector<8x32xf32>
    %cst_82 = arith.constant dense<0.000000e+00> : vector<8x32xf32>
    %167 = tpu.matmul %155, %32, %cst_82 {dimension_numbers = #tpu.dot_dimension_numbers<[1], [0], [0], [1], [0, 0, 1, 1], [], []>} : vector<8x32xf32>, vector<32x32xf32>, vector<8x32xf32> -> vector<8x32xf32>
    %168 = arith.addf %166, %167 : vector<8x32xf32>
    %cst_83 = arith.constant 5.000000e-01 : f32
    %169 = vector.broadcast %cst_83 : f32 to vector<8x32xf32>
    %170 = arith.mulf %169, %168 : vector<8x32xf32>
    %171 = math.tanh %170 : vector<8x32xf32>
    %cst_84 = arith.constant 5.000000e-01 : f32
    %172 = vector.broadcast %cst_84 : f32 to vector<8x32xf32>
    %173 = arith.mulf %172, %171 : vector<8x32xf32>
    %cst_85 = arith.constant 5.000000e-01 : f32
    %174 = vector.broadcast %cst_85 : f32 to vector<8x32xf32>
    %175 = arith.addf %173, %174 : vector<8x32xf32>
    %176 = vector.extract_strided_slice %21 {offsets = [24, 0], sizes = [8, 32], strides = [1, 1]} : vector<64x32xf32> to vector<8x32xf32>
    %cst_86 = arith.constant dense<0.000000e+00> : vector<8x32xf32>
    %177 = tpu.matmul %155, %34, %cst_86 {dimension_numbers = #tpu.dot_dimension_numbers<[1], [0], [0], [1], [0, 0, 1, 1], [], []>} : vector<8x32xf32>, vector<32x32xf32>, vector<8x32xf32> -> vector<8x32xf32>
    %178 = arith.addf %176, %177 : vector<8x32xf32>
    %179 = math.tanh %178 : vector<8x32xf32>
    %180 = vector.extract_strided_slice %28 {offsets = [24, 0], sizes = [8, 32], strides = [1, 1]} : vector<64x32xf32> to vector<8x32xf32>
    %cst_87 = arith.constant dense<0.000000e+00> : vector<8x32xf32>
    %181 = tpu.matmul %155, %36, %cst_87 {dimension_numbers = #tpu.dot_dimension_numbers<[1], [0], [0], [1], [0, 0, 1, 1], [], []>} : vector<8x32xf32>, vector<32x32xf32>, vector<8x32xf32> -> vector<8x32xf32>
    %182 = arith.addf %180, %181 : vector<8x32xf32>
    %cst_88 = arith.constant 5.000000e-01 : f32
    %183 = vector.broadcast %cst_88 : f32 to vector<8x32xf32>
    %184 = arith.mulf %183, %182 : vector<8x32xf32>
    %185 = math.tanh %184 : vector<8x32xf32>
    %cst_89 = arith.constant 5.000000e-01 : f32
    %186 = vector.broadcast %cst_89 : f32 to vector<8x32xf32>
    %187 = arith.mulf %186, %185 : vector<8x32xf32>
    %cst_90 = arith.constant 5.000000e-01 : f32
    %188 = vector.broadcast %cst_90 : f32 to vector<8x32xf32>
    %189 = arith.addf %187, %188 : vector<8x32xf32>
    %190 = arith.mulf %175, %153 : vector<8x32xf32>
    %191 = arith.mulf %165, %179 : vector<8x32xf32>
    %192 = arith.addf %190, %191 : vector<8x32xf32>
    %193 = math.tanh %192 : vector<8x32xf32>
    %194 = arith.mulf %189, %193 : vector<8x32xf32>
    %195 = vector.extract_strided_slice %7 {offsets = [32, 0], sizes = [8, 32], strides = [1, 1]} : vector<64x32xf32> to vector<8x32xf32>
    %cst_91 = arith.constant dense<0.000000e+00> : vector<8x32xf32>
    %196 = tpu.matmul %194, %30, %cst_91 {dimension_numbers = #tpu.dot_dimension_numbers<[1], [0], [0], [1], [0, 0, 1, 1], [], []>} : vector<8x32xf32>, vector<32x32xf32>, vector<8x32xf32> -> vector<8x32xf32>
    %197 = arith.addf %195, %196 : vector<8x32xf32>
    %cst_92 = arith.constant 5.000000e-01 : f32
    %198 = vector.broadcast %cst_92 : f32 to vector<8x32xf32>
    %199 = arith.mulf %198, %197 : vector<8x32xf32>
    %200 = math.tanh %199 : vector<8x32xf32>
    %cst_93 = arith.constant 5.000000e-01 : f32
    %201 = vector.broadcast %cst_93 : f32 to vector<8x32xf32>
    %202 = arith.mulf %201, %200 : vector<8x32xf32>
    %cst_94 = arith.constant 5.000000e-01 : f32
    %203 = vector.broadcast %cst_94 : f32 to vector<8x32xf32>
    %204 = arith.addf %202, %203 : vector<8x32xf32>
    %205 = vector.extract_strided_slice %14 {offsets = [32, 0], sizes = [8, 32], strides = [1, 1]} : vector<64x32xf32> to vector<8x32xf32>
    %cst_95 = arith.constant dense<0.000000e+00> : vector<8x32xf32>
    %206 = tpu.matmul %194, %32, %cst_95 {dimension_numbers = #tpu.dot_dimension_numbers<[1], [0], [0], [1], [0, 0, 1, 1], [], []>} : vector<8x32xf32>, vector<32x32xf32>, vector<8x32xf32> -> vector<8x32xf32>
    %207 = arith.addf %205, %206 : vector<8x32xf32>
    %cst_96 = arith.constant 5.000000e-01 : f32
    %208 = vector.broadcast %cst_96 : f32 to vector<8x32xf32>
    %209 = arith.mulf %208, %207 : vector<8x32xf32>
    %210 = math.tanh %209 : vector<8x32xf32>
    %cst_97 = arith.constant 5.000000e-01 : f32
    %211 = vector.broadcast %cst_97 : f32 to vector<8x32xf32>
    %212 = arith.mulf %211, %210 : vector<8x32xf32>
    %cst_98 = arith.constant 5.000000e-01 : f32
    %213 = vector.broadcast %cst_98 : f32 to vector<8x32xf32>
    %214 = arith.addf %212, %213 : vector<8x32xf32>
    %215 = vector.extract_strided_slice %21 {offsets = [32, 0], sizes = [8, 32], strides = [1, 1]} : vector<64x32xf32> to vector<8x32xf32>
    %cst_99 = arith.constant dense<0.000000e+00> : vector<8x32xf32>
    %216 = tpu.matmul %194, %34, %cst_99 {dimension_numbers = #tpu.dot_dimension_numbers<[1], [0], [0], [1], [0, 0, 1, 1], [], []>} : vector<8x32xf32>, vector<32x32xf32>, vector<8x32xf32> -> vector<8x32xf32>
    %217 = arith.addf %215, %216 : vector<8x32xf32>
    %218 = math.tanh %217 : vector<8x32xf32>
    %219 = vector.extract_strided_slice %28 {offsets = [32, 0], sizes = [8, 32], strides = [1, 1]} : vector<64x32xf32> to vector<8x32xf32>
    %cst_100 = arith.constant dense<0.000000e+00> : vector<8x32xf32>
    %220 = tpu.matmul %194, %36, %cst_100 {dimension_numbers = #tpu.dot_dimension_numbers<[1], [0], [0], [1], [0, 0, 1, 1], [], []>} : vector<8x32xf32>, vector<32x32xf32>, vector<8x32xf32> -> vector<8x32xf32>
    %221 = arith.addf %219, %220 : vector<8x32xf32>
    %cst_101 = arith.constant 5.000000e-01 : f32
    %222 = vector.broadcast %cst_101 : f32 to vector<8x32xf32>
    %223 = arith.mulf %222, %221 : vector<8x32xf32>
    %224 = math.tanh %223 : vector<8x32xf32>
    %cst_102 = arith.constant 5.000000e-01 : f32
    %225 = vector.broadcast %cst_102 : f32 to vector<8x32xf32>
    %226 = arith.mulf %225, %224 : vector<8x32xf32>
    %cst_103 = arith.constant 5.000000e-01 : f32
    %227 = vector.broadcast %cst_103 : f32 to vector<8x32xf32>
    %228 = arith.addf %226, %227 : vector<8x32xf32>
    %229 = arith.mulf %214, %192 : vector<8x32xf32>
    %230 = arith.mulf %204, %218 : vector<8x32xf32>
    %231 = arith.addf %229, %230 : vector<8x32xf32>
    %232 = math.tanh %231 : vector<8x32xf32>
    %233 = arith.mulf %228, %232 : vector<8x32xf32>
    %234 = vector.extract_strided_slice %7 {offsets = [40, 0], sizes = [8, 32], strides = [1, 1]} : vector<64x32xf32> to vector<8x32xf32>
    %cst_104 = arith.constant dense<0.000000e+00> : vector<8x32xf32>
    %235 = tpu.matmul %233, %30, %cst_104 {dimension_numbers = #tpu.dot_dimension_numbers<[1], [0], [0], [1], [0, 0, 1, 1], [], []>} : vector<8x32xf32>, vector<32x32xf32>, vector<8x32xf32> -> vector<8x32xf32>
    %236 = arith.addf %234, %235 : vector<8x32xf32>
    %cst_105 = arith.constant 5.000000e-01 : f32
    %237 = vector.broadcast %cst_105 : f32 to vector<8x32xf32>
    %238 = arith.mulf %237, %236 : vector<8x32xf32>
    %239 = math.tanh %238 : vector<8x32xf32>
    %cst_106 = arith.constant 5.000000e-01 : f32
    %240 = vector.broadcast %cst_106 : f32 to vector<8x32xf32>
    %241 = arith.mulf %240, %239 : vector<8x32xf32>
    %cst_107 = arith.constant 5.000000e-01 : f32
    %242 = vector.broadcast %cst_107 : f32 to vector<8x32xf32>
    %243 = arith.addf %241, %242 : vector<8x32xf32>
    %244 = vector.extract_strided_slice %14 {offsets = [40, 0], sizes = [8, 32], strides = [1, 1]} : vector<64x32xf32> to vector<8x32xf32>
    %cst_108 = arith.constant dense<0.000000e+00> : vector<8x32xf32>
    %245 = tpu.matmul %233, %32, %cst_108 {dimension_numbers = #tpu.dot_dimension_numbers<[1], [0], [0], [1], [0, 0, 1, 1], [], []>} : vector<8x32xf32>, vector<32x32xf32>, vector<8x32xf32> -> vector<8x32xf32>
    %246 = arith.addf %244, %245 : vector<8x32xf32>
    %cst_109 = arith.constant 5.000000e-01 : f32
    %247 = vector.broadcast %cst_109 : f32 to vector<8x32xf32>
    %248 = arith.mulf %247, %246 : vector<8x32xf32>
    %249 = math.tanh %248 : vector<8x32xf32>
    %cst_110 = arith.constant 5.000000e-01 : f32
    %250 = vector.broadcast %cst_110 : f32 to vector<8x32xf32>
    %251 = arith.mulf %250, %249 : vector<8x32xf32>
    %cst_111 = arith.constant 5.000000e-01 : f32
    %252 = vector.broadcast %cst_111 : f32 to vector<8x32xf32>
    %253 = arith.addf %251, %252 : vector<8x32xf32>
    %254 = vector.extract_strided_slice %21 {offsets = [40, 0], sizes = [8, 32], strides = [1, 1]} : vector<64x32xf32> to vector<8x32xf32>
    %cst_112 = arith.constant dense<0.000000e+00> : vector<8x32xf32>
    %255 = tpu.matmul %233, %34, %cst_112 {dimension_numbers = #tpu.dot_dimension_numbers<[1], [0], [0], [1], [0, 0, 1, 1], [], []>} : vector<8x32xf32>, vector<32x32xf32>, vector<8x32xf32> -> vector<8x32xf32>
    %256 = arith.addf %254, %255 : vector<8x32xf32>
    %257 = math.tanh %256 : vector<8x32xf32>
    %258 = vector.extract_strided_slice %28 {offsets = [40, 0], sizes = [8, 32], strides = [1, 1]} : vector<64x32xf32> to vector<8x32xf32>
    %cst_113 = arith.constant dense<0.000000e+00> : vector<8x32xf32>
    %259 = tpu.matmul %233, %36, %cst_113 {dimension_numbers = #tpu.dot_dimension_numbers<[1], [0], [0], [1], [0, 0, 1, 1], [], []>} : vector<8x32xf32>, vector<32x32xf32>, vector<8x32xf32> -> vector<8x32xf32>
    %260 = arith.addf %258, %259 : vector<8x32xf32>
    %cst_114 = arith.constant 5.000000e-01 : f32
    %261 = vector.broadcast %cst_114 : f32 to vector<8x32xf32>
    %262 = arith.mulf %261, %260 : vector<8x32xf32>
    %263 = math.tanh %262 : vector<8x32xf32>
    %cst_115 = arith.constant 5.000000e-01 : f32
    %264 = vector.broadcast %cst_115 : f32 to vector<8x32xf32>
    %265 = arith.mulf %264, %263 : vector<8x32xf32>
    %cst_116 = arith.constant 5.000000e-01 : f32
    %266 = vector.broadcast %cst_116 : f32 to vector<8x32xf32>
    %267 = arith.addf %265, %266 : vector<8x32xf32>
    %268 = arith.mulf %253, %231 : vector<8x32xf32>
    %269 = arith.mulf %243, %257 : vector<8x32xf32>
    %270 = arith.addf %268, %269 : vector<8x32xf32>
    %271 = math.tanh %270 : vector<8x32xf32>
    %272 = arith.mulf %267, %271 : vector<8x32xf32>
    %273 = vector.extract_strided_slice %7 {offsets = [48, 0], sizes = [8, 32], strides = [1, 1]} : vector<64x32xf32> to vector<8x32xf32>
    %cst_117 = arith.constant dense<0.000000e+00> : vector<8x32xf32>
    %274 = tpu.matmul %272, %30, %cst_117 {dimension_numbers = #tpu.dot_dimension_numbers<[1], [0], [0], [1], [0, 0, 1, 1], [], []>} : vector<8x32xf32>, vector<32x32xf32>, vector<8x32xf32> -> vector<8x32xf32>
    %275 = arith.addf %273, %274 : vector<8x32xf32>
    %cst_118 = arith.constant 5.000000e-01 : f32
    %276 = vector.broadcast %cst_118 : f32 to vector<8x32xf32>
    %277 = arith.mulf %276, %275 : vector<8x32xf32>
    %278 = math.tanh %277 : vector<8x32xf32>
    %cst_119 = arith.constant 5.000000e-01 : f32
    %279 = vector.broadcast %cst_119 : f32 to vector<8x32xf32>
    %280 = arith.mulf %279, %278 : vector<8x32xf32>
    %cst_120 = arith.constant 5.000000e-01 : f32
    %281 = vector.broadcast %cst_120 : f32 to vector<8x32xf32>
    %282 = arith.addf %280, %281 : vector<8x32xf32>
    %283 = vector.extract_strided_slice %14 {offsets = [48, 0], sizes = [8, 32], strides = [1, 1]} : vector<64x32xf32> to vector<8x32xf32>
    %cst_121 = arith.constant dense<0.000000e+00> : vector<8x32xf32>
    %284 = tpu.matmul %272, %32, %cst_121 {dimension_numbers = #tpu.dot_dimension_numbers<[1], [0], [0], [1], [0, 0, 1, 1], [], []>} : vector<8x32xf32>, vector<32x32xf32>, vector<8x32xf32> -> vector<8x32xf32>
    %285 = arith.addf %283, %284 : vector<8x32xf32>
    %cst_122 = arith.constant 5.000000e-01 : f32
    %286 = vector.broadcast %cst_122 : f32 to vector<8x32xf32>
    %287 = arith.mulf %286, %285 : vector<8x32xf32>
    %288 = math.tanh %287 : vector<8x32xf32>
    %cst_123 = arith.constant 5.000000e-01 : f32
    %289 = vector.broadcast %cst_123 : f32 to vector<8x32xf32>
    %290 = arith.mulf %289, %288 : vector<8x32xf32>
    %cst_124 = arith.constant 5.000000e-01 : f32
    %291 = vector.broadcast %cst_124 : f32 to vector<8x32xf32>
    %292 = arith.addf %290, %291 : vector<8x32xf32>
    %293 = vector.extract_strided_slice %21 {offsets = [48, 0], sizes = [8, 32], strides = [1, 1]} : vector<64x32xf32> to vector<8x32xf32>
    %cst_125 = arith.constant dense<0.000000e+00> : vector<8x32xf32>
    %294 = tpu.matmul %272, %34, %cst_125 {dimension_numbers = #tpu.dot_dimension_numbers<[1], [0], [0], [1], [0, 0, 1, 1], [], []>} : vector<8x32xf32>, vector<32x32xf32>, vector<8x32xf32> -> vector<8x32xf32>
    %295 = arith.addf %293, %294 : vector<8x32xf32>
    %296 = math.tanh %295 : vector<8x32xf32>
    %297 = vector.extract_strided_slice %28 {offsets = [48, 0], sizes = [8, 32], strides = [1, 1]} : vector<64x32xf32> to vector<8x32xf32>
    %cst_126 = arith.constant dense<0.000000e+00> : vector<8x32xf32>
    %298 = tpu.matmul %272, %36, %cst_126 {dimension_numbers = #tpu.dot_dimension_numbers<[1], [0], [0], [1], [0, 0, 1, 1], [], []>} : vector<8x32xf32>, vector<32x32xf32>, vector<8x32xf32> -> vector<8x32xf32>
    %299 = arith.addf %297, %298 : vector<8x32xf32>
    %cst_127 = arith.constant 5.000000e-01 : f32
    %300 = vector.broadcast %cst_127 : f32 to vector<8x32xf32>
    %301 = arith.mulf %300, %299 : vector<8x32xf32>
    %302 = math.tanh %301 : vector<8x32xf32>
    %cst_128 = arith.constant 5.000000e-01 : f32
    %303 = vector.broadcast %cst_128 : f32 to vector<8x32xf32>
    %304 = arith.mulf %303, %302 : vector<8x32xf32>
    %cst_129 = arith.constant 5.000000e-01 : f32
    %305 = vector.broadcast %cst_129 : f32 to vector<8x32xf32>
    %306 = arith.addf %304, %305 : vector<8x32xf32>
    %307 = arith.mulf %292, %270 : vector<8x32xf32>
    %308 = arith.mulf %282, %296 : vector<8x32xf32>
    %309 = arith.addf %307, %308 : vector<8x32xf32>
    %310 = math.tanh %309 : vector<8x32xf32>
    %311 = arith.mulf %306, %310 : vector<8x32xf32>
    %312 = vector.extract_strided_slice %7 {offsets = [56, 0], sizes = [8, 32], strides = [1, 1]} : vector<64x32xf32> to vector<8x32xf32>
    %cst_130 = arith.constant dense<0.000000e+00> : vector<8x32xf32>
    %313 = tpu.matmul %311, %30, %cst_130 {dimension_numbers = #tpu.dot_dimension_numbers<[1], [0], [0], [1], [0, 0, 1, 1], [], []>} : vector<8x32xf32>, vector<32x32xf32>, vector<8x32xf32> -> vector<8x32xf32>
    %314 = arith.addf %312, %313 : vector<8x32xf32>
    %cst_131 = arith.constant 5.000000e-01 : f32
    %315 = vector.broadcast %cst_131 : f32 to vector<8x32xf32>
    %316 = arith.mulf %315, %314 : vector<8x32xf32>
    %317 = math.tanh %316 : vector<8x32xf32>
    %cst_132 = arith.constant 5.000000e-01 : f32
    %318 = vector.broadcast %cst_132 : f32 to vector<8x32xf32>
    %319 = arith.mulf %318, %317 : vector<8x32xf32>
    %cst_133 = arith.constant 5.000000e-01 : f32
    %320 = vector.broadcast %cst_133 : f32 to vector<8x32xf32>
    %321 = arith.addf %319, %320 : vector<8x32xf32>
    %322 = vector.extract_strided_slice %14 {offsets = [56, 0], sizes = [8, 32], strides = [1, 1]} : vector<64x32xf32> to vector<8x32xf32>
    %cst_134 = arith.constant dense<0.000000e+00> : vector<8x32xf32>
    %323 = tpu.matmul %311, %32, %cst_134 {dimension_numbers = #tpu.dot_dimension_numbers<[1], [0], [0], [1], [0, 0, 1, 1], [], []>} : vector<8x32xf32>, vector<32x32xf32>, vector<8x32xf32> -> vector<8x32xf32>
    %324 = arith.addf %322, %323 : vector<8x32xf32>
    %cst_135 = arith.constant 5.000000e-01 : f32
    %325 = vector.broadcast %cst_135 : f32 to vector<8x32xf32>
    %326 = arith.mulf %325, %324 : vector<8x32xf32>
    %327 = math.tanh %326 : vector<8x32xf32>
    %cst_136 = arith.constant 5.000000e-01 : f32
    %328 = vector.broadcast %cst_136 : f32 to vector<8x32xf32>
    %329 = arith.mulf %328, %327 : vector<8x32xf32>
    %cst_137 = arith.constant 5.000000e-01 : f32
    %330 = vector.broadcast %cst_137 : f32 to vector<8x32xf32>
    %331 = arith.addf %329, %330 : vector<8x32xf32>
    %332 = vector.extract_strided_slice %21 {offsets = [56, 0], sizes = [8, 32], strides = [1, 1]} : vector<64x32xf32> to vector<8x32xf32>
    %cst_138 = arith.constant dense<0.000000e+00> : vector<8x32xf32>
    %333 = tpu.matmul %311, %34, %cst_138 {dimension_numbers = #tpu.dot_dimension_numbers<[1], [0], [0], [1], [0, 0, 1, 1], [], []>} : vector<8x32xf32>, vector<32x32xf32>, vector<8x32xf32> -> vector<8x32xf32>
    %334 = arith.addf %332, %333 : vector<8x32xf32>
    %335 = math.tanh %334 : vector<8x32xf32>
    %336 = vector.extract_strided_slice %28 {offsets = [56, 0], sizes = [8, 32], strides = [1, 1]} : vector<64x32xf32> to vector<8x32xf32>
    %cst_139 = arith.constant dense<0.000000e+00> : vector<8x32xf32>
    %337 = tpu.matmul %311, %36, %cst_139 {dimension_numbers = #tpu.dot_dimension_numbers<[1], [0], [0], [1], [0, 0, 1, 1], [], []>} : vector<8x32xf32>, vector<32x32xf32>, vector<8x32xf32> -> vector<8x32xf32>
    %338 = arith.addf %336, %337 : vector<8x32xf32>
    %cst_140 = arith.constant 5.000000e-01 : f32
    %339 = vector.broadcast %cst_140 : f32 to vector<8x32xf32>
    %340 = arith.mulf %339, %338 : vector<8x32xf32>
    %341 = math.tanh %340 : vector<8x32xf32>
    %cst_141 = arith.constant 5.000000e-01 : f32
    %342 = vector.broadcast %cst_141 : f32 to vector<8x32xf32>
    %343 = arith.mulf %342, %341 : vector<8x32xf32>
    %cst_142 = arith.constant 5.000000e-01 : f32
    %344 = vector.broadcast %cst_142 : f32 to vector<8x32xf32>
    %345 = arith.addf %343, %344 : vector<8x32xf32>
    %346 = arith.mulf %331, %309 : vector<8x32xf32>
    %347 = arith.mulf %321, %335 : vector<8x32xf32>
    %348 = arith.addf %346, %347 : vector<8x32xf32>
    %349 = math.tanh %348 : vector<8x32xf32>
    %350 = arith.mulf %345, %349 : vector<8x32xf32>
    %c0_143 = arith.constant 0 : index
    %c0_144 = arith.constant 0 : index
    %351 = vector.load %arg4[%c0_143, %c0_144] : memref<32x32xf32, #tpu.memory_space<vmem>>, vector<32x32xf32>
    %cst_145 = arith.constant dense<0.000000e+00> : vector<8x32xf32>
    %352 = tpu.matmul %350, %351, %cst_145 {dimension_numbers = #tpu.dot_dimension_numbers<[1], [0], [0], [1], [0, 0, 1, 1], [], []>} : vector<8x32xf32>, vector<32x32xf32>, vector<8x32xf32> -> vector<8x32xf32>
    %c0_146 = arith.constant 0 : index
    %c0_147 = arith.constant 0 : index
    %353 = vector.load %arg5[%c0_146, %c0_147] : memref<1x32xf32, #tpu.memory_space<vmem>>, vector<1x32xf32>
    %354 = vector.broadcast %353 : vector<1x32xf32> to vector<8x32xf32>
    %355 = arith.addf %352, %354 : vector<8x32xf32>
    %c0_148 = arith.constant 0 : index
    %c0_149 = arith.constant 0 : index
    %356 = vector.load %arg6[%c0_148, %c0_149] : memref<8x32xf32, #tpu.memory_space<vmem>>, vector<8x32xf32>
    tpu.vector_store %arg6[%c0_148, %c0_149], %355 {strides = array<i32>} : memref<8x32xf32, #tpu.memory_space<vmem>>, vector<8x32xf32>,
    return
  }
}

</mosaic_0001>

<bundles_post_ra>
// kernel: tpu_custom_call.1
= control target key start
LH: loop header
LB: loop body
LE: loop exit
PB: predicated region body
PF: predicated region fallthrough
CT: control target
= control target key end

     0   :  { %11 = vsyncpa [#allocation3], 0  ;;  %s1866_s0 = inlined_call_operand.vmem [shape: f32[64,32], index: 0, kind: input, shape index: {}]   ;;  %s1867_s1 = inlined_call_operand.hbm [shape: f32[4,32,32], index: 1, kind: input, shape index: {}]   ;;  %s1868_s2 = inlined_call_operand.hbm [shape: f32[4,32,32], index: 2, kind: input, shape index: {}]   ;;  %s1869_s3 = inlined_call_operand.vmem [shape: f32[4,1,32], index: 3, kind: input, shape index: {}]   ;;  %s1870_s4 = inlined_call_operand.vmem [shape: f32[32,32], index: 4, kind: input, shape index: {}]   ;;  %s1871_s5 = inlined_call_operand.vmem [shape: f32[1,32], index: 5, kind: input, shape index: {}]   ;;  %s1872_s6 = inlined_call_operand.hbm [shape: f32[8,32], index: 6, kind: output, shape index: {}]  }
   0x1   :  { %12 = vsyncpa [#allocation6], 0 }
   0x2   :  { %13 = vsyncpa [#allocation4], 0  ;;  %s20_s23 = sshll.u32 %s1867_s1, 4  ;;  %s1433_s24 = smov [#allocation2]   ;;  %s21_s23 = int_to_ptr.hbm [resolvable:$true] %s20_s23 }
   0x3   :  { %s22_s25 = sshll.u32 %s1433_s24, 4  ;;  %s33_s28 = sshll.u32 %s1868_s2, 4  ;;  %s23_s25 = int_to_ptr.vmem [resolvable:$true] %s22_s25  ;;  %s34_s28 = int_to_ptr.hbm [resolvable:$true] %s33_s28 }
   0x4   :  { %s1434_s29 = smov 128   ;;  %s1435_s30 = smov 8  }
   0x5   :  { %28 = dma.hbm_to_vmem [thread:$0]  %s21_s23, 2048, %s23_s25, [#allocation3], %s1434_s29, %s1434_s29, %s1435_s30  }
   0x6   :  { %s1436_s7 = smov [#allocation5]  }
   0x7   :  { %s35_s8 = sshll.u32 %s1436_s7, 4  ;;  %s36_s8 = int_to_ptr.vmem [resolvable:$true] %s35_s8 }
   0x8   :  { %41 = dma.hbm_to_vmem [thread:$0]  %s34_s28, 2048, %s36_s8, [#allocation6], %s1434_s29, %s1434_s29, %s1435_s30  }
   0x9   :  { %1427 = dma.done.wait [#allocation3], 2048  }
   0xa   :  { %1428 = vsyncadd [#allocation3], 4294965248 }
   0xb   :  { %1429 = dma.done.wait [#allocation6], 2048  }
   0xc   :  { %1430 = vsyncadd [#allocation6], 4294965248  ;;  %v67_v0 = vld [vmem:[#allocation2 + $0x18] sm:$0xff]  ;;  %v66_v4 = vld [vmem:[#allocation2 + $0x10] sm:$0xff]  ;;  %vm72_vm0 = vcmask 261120   ;;  %v1437_v40 = vmov 0.0  }
   0xd   :  { %v142_v1 = vld [vmem:[#allocation2 + $0x38] sm:$0xff]  ;;  %109 = vmatpush.msra.mxu0 %v67_v0  ;;  %v141_v5 = vld [vmem:[#allocation2 + $0x30] sm:$0xff]  ;;  %v65_v8 = vld [vmem:[#allocation2 + $0x8] sm:$0xff]  ;;  %s1438_s12 = smov [#allocation7]   ;;  %s1189_s16 = sshll.u32 %s1872_s6, 4  ;;  %s1190_s16 = int_to_ptr.hbm [resolvable:$true] %s1189_s16 }
   0xe   :  { %v193_v2 = vld [vmem:[#allocation2 + $0x58] sm:$0xff]  ;;  %160 = vmatpush.msra.mxu1 %v142_v1  ;;  %v192_v6 = vld [vmem:[#allocation2 + $0x50] sm:$0xff]  ;;  %v140_v9 = vld [vmem:[#allocation2 + $0x28] sm:$0xff]  ;;  %s1187_s13 = sshll.u32 %s1438_s12, 4  ;;  %s1188_s13 = int_to_ptr.vmem [resolvable:$true] %s1187_s13 }
   0xf   :  { %v244_v3 = vld [vmem:[#allocation2 + $0x78] sm:$0xff]  ;;  %211 = vmatpush.msra.mxu2 %v193_v2  ;;  %v243_v7 = vld [vmem:[#allocation2 + $0x70] sm:$0xff]  ;;  %110 = vmatpush.msra.mxu0 %v66_v4  ;;  %v191_v10 = vld [vmem:[#allocation2 + $0x48] sm:$0xff] }
  0x10   :  { %262 = vmatpush.msra.mxu3 %v244_v3  ;;  %161 = vmatpush.msra.mxu1 %v141_v5  ;;  %v242_v11 = vld [vmem:[#allocation2 + $0x68] sm:$0xff]  ;;  %v64_v12 = vld [vmem:[#allocation2] sm:$0xff]  ;;  %v1483_v17 = vld [vmem:[#allocation5 + $0x18] sm:$0xff] }
  0x11   :  { %212 = vmatpush.msra.mxu2 %v192_v6  ;;  %v139_v13 = vld [vmem:[#allocation2 + $0x20] sm:$0xff]  ;;  %111 = vmatpush.msra.mxu0 %v65_v8  ;;  %v1485_v18 = vld [vmem:[#allocation5 + $0x38] sm:$0xff]  ;;  %v1493_v21 = vld [vmem:[#allocation5 + $0x10] sm:$0xff] }
  0x12   :  { %263 = vmatpush.msra.mxu3 %v243_v7  ;;  %162 = vmatpush.msra.mxu1 %v140_v9  ;;  %v190_v14 = vld [vmem:[#allocation2 + $0x40] sm:$0xff]  ;;  %v1487_v19 = vld [vmem:[#allocation5 + $0x58] sm:$0xff]  ;;  %v1497_v22 = vld [vmem:[#allocation5 + $0x30] sm:$0xff] }
  0x13   :  { %v241_v15 = vld [vmem:[#allocation2 + $0x60] sm:$0xff]  ;;  %213 = vmatpush.msra.mxu2 %v191_v10  ;;  %112 = vmatpush.msra.mxu0 %v64_v12  ;;  %v1491_v20 = vld [vmem:[#allocation5 + $0x78] sm:$0xff]  ;;  %v1499_v23 = vld [vmem:[#allocation5 + $0x50] sm:$0xff] }
  0x14   :  { %264 = vmatpush.msra.mxu3 %v242_v11  ;;  %v56_v16 = vld [vmem:[%s1866_s0] sm:$0xff]  ;;  %163 = vmatpush.msra.mxu1 %v139_v13  ;;  %v1501_v24 = vld [vmem:[#allocation5 + $0x70] sm:$0xff]  ;;  %v1505_v25 = vld [vmem:[#allocation5 + $0x8] sm:$0xff] }
  0x15   :  { %214 = vmatpush.msra.mxu2 %v190_v14  ;;  %1200 = vmatmul.msk.f32.vlgmr.msra.gmra.mxu0 %vm72_vm0, %v56_v16  ;;  %v1507_v26 = vld [vmem:[#allocation5 + $0x28] sm:$0xff]  ;;  %v58_v30 = vld [vmem:[%s1866_s0 + $0x10] sm:$0xff]  ;;  %v1537_v31 = vld [vmem:[#allocation5] sm:$0xff] }
  0x16   :  { %265 = vmatpush.msra.mxu3 %v241_v15  ;;  %1209 = vmatmul.msk.f32.vlgmr.msra.gmra.mxu1 %vm72_vm0, %v56_v16  ;;  %v1513_v27 = vld [vmem:[#allocation5 + $0x48] sm:$0xff]  ;;  %v1539_v32 = vld [vmem:[#allocation5 + $0x20] sm:$0xff]  ;;  %v59_v35 = vld [vmem:[%s1866_s0 + $0x18] sm:$0xff] }
  0x17   :  { %1218 = vmatmul.msk.f32.vlgmr.msra.gmra.mxu2 %vm72_vm0, %v56_v16  ;;  %1227 = vmatmul.msk.f32.vlgmr.msra.gmra.mxu3 %vm72_vm0, %v56_v16  ;;  %v1515_v28 = vld [vmem:[#allocation5 + $0x68] sm:$0xff]  ;;  %v1541_v33 = vld [vmem:[#allocation5 + $0x40] sm:$0xff]  ;;  %v62_v38 = vld [vmem:[%s1866_s0 + $0x30] sm:$0xff] }
  0x18   :  { %325 = vmatpush.msrb.mxu0 %v1483_v17  ;;  %350 = vmatpush.msrb.mxu1 %v1485_v18  ;;  %v57_v29 = vld [vmem:[%s1866_s0 + $0x8] sm:$0xff]  ;;  %v1545_v34 = vld [vmem:[#allocation5 + $0x60] sm:$0xff]  ;;  %v63_v39 = vld [vmem:[%s1866_s0 + $0x38] sm:$0xff] }
  0x19   :  { %375 = vmatpush.msrb.mxu2 %v1487_v19  ;;  %397 = vmatpush.msrb.mxu3 %v1491_v20  ;;  %v60_v36 = vld [vmem:[%s1866_s0 + $0x20] sm:$0xff]  ;;  %v61_v37 = vld [vmem:[%s1866_s0 + $0x28] sm:$0xff] }
  0x1a   :  { %326 = vmatpush.msrb.mxu0 %v1493_v21  ;;  %351 = vmatpush.msrb.mxu1 %v1497_v22  ;;  %v1270_v43 = vld [vmem:[%s1869_s3] ss:$0 sm:$0xff]  ;;  %v1271_v44 = vld [vmem:[%s1869_s3 + $0x1] ss:$0 sm:$0xff]  ;;  %v1633_v51 = vld [vmem:[%s1869_s3 + $0x2] ss:$0 sm:$0xff] }
  0x1b   :  { %376 = vmatpush.msrb.mxu2 %v1499_v23  ;;  %398 = vmatpush.msrb.mxu3 %v1501_v24  ;;  %v1638_v52 = vld [vmem:[%s1869_s3 + $0x3] ss:$0 sm:$0xff] }
  0x1c   :  { %327 = vmatpush.msrb.mxu0 %v1505_v25  ;;  %352 = vmatpush.msrb.mxu1 %v1507_v26 }
  0x1d   :  { %377 = vmatpush.msrb.mxu2 %v1513_v27  ;;  %399 = vmatpush.msrb.mxu3 %v1515_v28 }
  0x1e   :  { %1201 = vmatmul.msk.f32.gmra.mxu0 %vm72_vm0, %v57_v29  ;;  %1210 = vmatmul.msk.f32.gmra.mxu1 %vm72_vm0, %v57_v29 }
  0x1f   :  { %1219 = vmatmul.msk.f32.gmra.mxu2 %vm72_vm0, %v57_v29  ;;  %1228 = vmatmul.msk.f32.gmra.mxu3 %vm72_vm0, %v57_v29 }
  0x20   :  { %328 = vmatpush.msrb.mxu0 %v1537_v31  ;;  %353 = vmatpush.msrb.mxu1 %v1539_v32 }
  0x21   :  { %378 = vmatpush.msrb.mxu2 %v1541_v33  ;;  %400 = vmatpush.msrb.mxu3 %v1545_v34 }
  0x22   :  { %430 = vmatpush.msra.mxu0 %v1483_v17  ;;  %455 = vmatpush.msra.mxu1 %v1485_v18 }
  0x23   :  { %480 = vmatpush.msra.mxu2 %v1487_v19  ;;  %502 = vmatpush.msra.mxu3 %v1491_v20 }
  0x24   :  { %431 = vmatpush.msra.mxu0 %v1493_v21  ;;  %456 = vmatpush.msra.mxu1 %v1497_v22 }
  0x25   :  { %481 = vmatpush.msra.mxu2 %v1499_v23  ;;  %503 = vmatpush.msra.mxu3 %v1501_v24 }
  0x26   :  { %1202 = vmatmul.msk.f32.gmra.mxu0 %vm72_vm0, %v58_v30  ;;  %1211 = vmatmul.msk.f32.gmra.mxu1 %vm72_vm0, %v58_v30 }
  0x27   :  { %1220 = vmatmul.msk.f32.gmra.mxu2 %vm72_vm0, %v58_v30  ;;  %1229 = vmatmul.msk.f32.gmra.mxu3 %vm72_vm0, %v58_v30 }
  0x28   :  { %432 = vmatpush.msra.mxu0 %v1505_v25  ;;  %457 = vmatpush.msra.mxu1 %v1507_v26 }
  0x29   :  { %482 = vmatpush.msra.mxu2 %v1513_v27  ;;  %504 = vmatpush.msra.mxu3 %v1515_v28 }
  0x2a   :  { %433 = vmatpush.msra.mxu0 %v1537_v31  ;;  %458 = vmatpush.msra.mxu1 %v1539_v32 }
  0x2b   :  { %483 = vmatpush.msra.mxu2 %v1541_v33  ;;  %505 = vmatpush.msra.mxu3 %v1545_v34 }
  0x2e   :  { %1203 = vmatmul.msk.f32.gmra.mxu0 %vm72_vm0, %v59_v35  ;;  %1212 = vmatmul.msk.f32.gmra.mxu1 %vm72_vm0, %v59_v35 }
  0x2f   :  { %1221 = vmatmul.msk.f32.gmra.mxu2 %vm72_vm0, %v59_v35  ;;  %1230 = vmatmul.msk.f32.gmra.mxu3 %vm72_vm0, %v59_v35 }
  0x36   :  { %1204 = vmatmul.msk.f32.gmra.mxu0 %vm72_vm0, %v60_v36  ;;  %1213 = vmatmul.msk.f32.gmra.mxu1 %vm72_vm0, %v60_v36 }
  0x37   :  { %1222 = vmatmul.msk.f32.gmra.mxu2 %vm72_vm0, %v60_v36  ;;  %1231 = vmatmul.msk.f32.gmra.mxu3 %vm72_vm0, %v60_v36 }
  0x3e   :  { %1205 = vmatmul.msk.f32.gmra.mxu0 %vm72_vm0, %v61_v37  ;;  %1214 = vmatmul.msk.f32.gmra.mxu1 %vm72_vm0, %v61_v37 }
  0x3f   :  { %1223 = vmatmul.msk.f32.gmra.mxu2 %vm72_vm0, %v61_v37  ;;  %1232 = vmatmul.msk.f32.gmra.mxu3 %vm72_vm0, %v61_v37 }
  0x46   :  { %1206 = vmatmul.msk.f32.gmra.mxu0 %vm72_vm0, %v62_v38  ;;  %1215 = vmatmul.msk.f32.gmra.mxu1 %vm72_vm0, %v62_v38 }
  0x47   :  { %1224 = vmatmul.msk.f32.gmra.mxu2 %vm72_vm0, %v62_v38  ;;  %1233 = vmatmul.msk.f32.gmra.mxu3 %vm72_vm0, %v62_v38 }
  0x4e   :  { %1207 = vmatmul.msk.f32.gmra.mxu0 %vm72_vm0, %v63_v39  ;;  %1216 = vmatmul.msk.f32.gmra.mxu1 %vm72_vm0, %v63_v39 }
  0x4f   :  { %1225 = vmatmul.msk.f32.gmra.mxu2 %vm72_vm0, %v63_v39  ;;  %1234 = vmatmul.msk.f32.gmra.mxu3 %vm72_vm0, %v63_v39 }
  0x56   :  { %329 = vmatmul.f32.vlgmr.msrb.gmra.mxu0 %v1437_v40  ;;  %354 = vmatmul.f32.vlgmr.msrb.gmra.mxu1 %v1437_v40 }
  0x57   :  { %379 = vmatmul.f32.vlgmr.msrb.gmra.mxu2 %v1437_v40  ;;  %401 = vmatmul.f32.vlgmr.msrb.gmra.mxu3 %v1437_v40 }
  0x58   :  { %535 = vmatpush.msrb.mxu0 %v1483_v17  ;;  %560 = vmatpush.msrb.mxu1 %v1485_v18 }
  0x59   :  { %585 = vmatpush.msrb.mxu2 %v1487_v19  ;;  %607 = vmatpush.msrb.mxu3 %v1491_v20 }
  0x5a   :  { %536 = vmatpush.msrb.mxu0 %v1493_v21  ;;  %561 = vmatpush.msrb.mxu1 %v1497_v22 }
  0x5b   :  { %586 = vmatpush.msrb.mxu2 %v1499_v23  ;;  %608 = vmatpush.msrb.mxu3 %v1501_v24 }
  0x5c   :  { %537 = vmatpush.msrb.mxu0 %v1505_v25  ;;  %562 = vmatpush.msrb.mxu1 %v1507_v26 }
  0x5d   :  { %587 = vmatpush.msrb.mxu2 %v1513_v27  ;;  %609 = vmatpush.msrb.mxu3 %v1515_v28 }
  0x5e   :  { %538 = vmatpush.msrb.mxu0 %v1537_v31  ;;  %563 = vmatpush.msrb.mxu1 %v1539_v32 }
  0x5f   :  { %588 = vmatpush.msrb.mxu2 %v1541_v33  ;;  %610 = vmatpush.msrb.mxu3 %v1545_v34 }
  0x92   :  { %v114_v41 = vpop.f32.mrf.mxu0 }
  0x93   :  { %v165_v42 = vpop.f32.mrf.mxu1 }
  0x9a   :  { %v1622_v45 = vpop.f32.mrf.mxu2  ;;  %v1624_v46 = vpop.f32.mrf.mxu3 }
  0x9b   :  { %v117_v47 = vpop.f32.mrf.mxu0  ;;  %v168_v48 = vpop.f32.mrf.mxu1 }
  0x9c   :  { %v1626_v49 = vadd.f32 %v1270_v43, %v117_v47  ;;  %v1628_v50 = vadd.f32 %v1271_v44, %v168_v48 }
  0xa2   :  { %v219_v53 = vpop.f32.mrf.mxu2  ;;  %v270_v54 = vpop.f32.mrf.mxu3 }
  0xa3   :  { %v1641_v55 = vadd.f32 %v1633_v51, %v219_v53  ;;  %v1644_v56 = vadd.f32 %v1638_v52, %v270_v54  ;;  %v120_v57 = vpop.f32.mrf.mxu0  ;;  %v171_v58 = vpop.f32.mrf.mxu1 }
  0xa4   :  { %v1646_v59 = vadd.f32 %v1270_v43, %v120_v57  ;;  %v1648_v60 = vadd.f32 %v1271_v44, %v171_v58 }
  0xaa   :  { %v222_v61 = vpop.f32.mrf.mxu2  ;;  %v273_v62 = vpop.f32.mrf.mxu3 }
  0xab   :  { %v1651_v63 = vadd.f32 %v1633_v51, %v222_v61  ;;  %v1654_v0 = vadd.f32 %v1638_v52, %v273_v62  ;;  %v123_v1 = vpop.f32.mrf.mxu0  ;;  %v174_v2 = vpop.f32.mrf.mxu1 }
  0xac   :  { %v1656_v3 = vadd.f32 %v1270_v43, %v123_v1  ;;  %v1658_v4 = vadd.f32 %v1271_v44, %v174_v2 }
  0xb2   :  { %v225_v5 = vpop.f32.mrf.mxu2  ;;  %v276_v6 = vpop.f32.mrf.mxu3 }
  0xb3   :  { %v1661_v7 = vadd.f32 %v1633_v51, %v225_v5  ;;  %v1664_v8 = vadd.f32 %v1638_v52, %v276_v6  ;;  %v126_v9 = vpop.f32.mrf.mxu0  ;;  %v177_v10 = vpop.f32.mrf.mxu1 }
  0xb4   :  { %v1666_v11 = vadd.f32 %v1270_v43, %v126_v9  ;;  %v1668_v12 = vadd.f32 %v1271_v44, %v177_v10  ;;  %v115_v9 = vadd.f32 %v1270_v43, %v114_v41  ;;  %v166_v10 = vadd.f32 %v1271_v44, %v165_v42 }
  0xb5   :  { %v268_v41 = vadd.f32 %v1638_v52, %v1624_v46 }
  0xba   :  { %v228_v13 = vpop.f32.mrf.mxu2  ;;  %v279_v14 = vpop.f32.mrf.mxu3 }
  0xbb   :  { %v1671_v15 = vadd.f32 %v1633_v51, %v228_v13  ;;  %v1674_v16 = vadd.f32 %v1638_v52, %v279_v14  ;;  %v129_v29 = vpop.f32.mrf.mxu0  ;;  %v180_v30 = vpop.f32.mrf.mxu1 }
  0xbc   :  { %v1676_v35 = vadd.f32 %v1270_v43, %v129_v29  ;;  %v1678_v36 = vadd.f32 %v1271_v44, %v180_v30 }
  0xc2   :  { %v231_v37 = vpop.f32.mrf.mxu2  ;;  %v282_v38 = vpop.f32.mrf.mxu3 }
  0xc3   :  { %v1681_v39 = vadd.f32 %v1633_v51, %v231_v37  ;;  %v1684_v40 = vadd.f32 %v1638_v52, %v282_v38  ;;  %v132_v47 = vpop.f32.mrf.mxu0  ;;  %v183_v48 = vpop.f32.mrf.mxu1 }
  0xc4   :  { %v1686_v53 = vadd.f32 %v1270_v43, %v132_v47  ;;  %v1688_v54 = vadd.f32 %v1271_v44, %v183_v48 }
  0xca   :  { %v234_v57 = vpop.f32.mrf.mxu2  ;;  %v285_v58 = vpop.f32.mrf.mxu3 }
  0xcb   :  { %v1691_v61 = vadd.f32 %v1633_v51, %v234_v57  ;;  %v1694_v62 = vadd.f32 %v1638_v52, %v285_v58  ;;  %v135_v1 = vpop.f32.mrf.mxu0  ;;  %v186_v2 = vpop.f32.mrf.mxu1 }
  0xcc   :  { %v1696_v5 = vadd.f32 %v1270_v43, %v135_v1  ;;  %v1698_v6 = vadd.f32 %v1271_v44, %v186_v2  ;;  %v217_v1 = vadd.f32 %v1633_v51, %v1622_v45 }
  0xd2   :  { %v237_v13 = vpop.f32.mrf.mxu2  ;;  %v288_v14 = vpop.f32.mrf.mxu3 }
  0xd3   :  { %v1701_v29 = vadd.f32 %v1633_v51, %v237_v13  ;;  %v1704_v30 = vadd.f32 %v1638_v52, %v288_v14  ;;  %v330_v37 = vpop.f32.mrf.mxu0  ;;  %v355_v38 = vpop.f32.mrf.mxu1 }
  0xd4   :  { %v333_v47 = vadd.f32 %v330_v37, %v115_v9  ;;  %v358_v48 = vadd.f32 %v355_v38, %v166_v10 }
  0xd5   :  { %1873 = vst [vmem:[#allocation11_spill] sm:$0xff] %v1704_v30 }
  0xd6   :  { %v334_v57 = vmul.f32 0.5, %v333_v47  ;;  %v359_v58 = vmul.f32 0.5, %v358_v48 }
  0xd8   :  { %1275 = vtanh.f32 %v334_v57 }
  0xd9   :  { %1277 = vtanh.f32 %v359_v58 }
  0xda   :  { %v380_v42 = vpop.f32.mrf.mxu2  ;;  %v402_v43 = vpop.f32.mrf.mxu3 }
  0xdb   :  { %v383_v44 = vadd.f32 %v380_v42, %v217_v1  ;;  %v405_v2 = vadd.f32 %v402_v43, %v268_v41 }
  0xdd   :  { %1279 = vtanh.f32 %v383_v44  ;;  %v406_v13 = vmul.f32 0.5, %v405_v2 }
  0xde   :  { %v1276_v14 = vpop.eup %1275 }
  0xdf   :  { %v1278_v30 = vpop.eup %1277  ;;  %v336_v9 = vmul.f32 0.5, %v1276_v14  ;;  %1281 = vtanh.f32 %v406_v13 }
  0xe0   :  { %v361_v10 = vmul.f32 0.5, %v1278_v30 }
  0xe1   :  { %v337_v37 = vadd.f32 0.5, %v336_v9 }
  0xe2   :  { %v362_v38 = vadd.f32 0.5, %v361_v10 }
  0xe3   :  { %v1280_v47 = vpop.eup %1279 }
  0xe4   :  { %v410_v48 = vmul.f32 0.0, %v362_v38  ;;  %v411_v45 = vmul.f32 %v1280_v47, %v337_v37 }
  0xe5   :  { %v1282_v51 = vpop.eup %1281 }
  0xe6   :  { %v412_v57 = vadd.f32 %v411_v45, %v410_v48  ;;  %v408_v46 = vmul.f32 0.5, %v1282_v51 }
  0xe8   :  { %1283 = vtanh.f32 %v412_v57  ;;  %v409_v52 = vadd.f32 0.5, %v408_v46 }
  0xee   :  { %v1284_v58 = vpop.eup %1283 }
  0xef   :  { %v414_v1 = vmul.f32 %v1284_v58, %v409_v52 }
  0xf1   :  { %1235 = vmatmul.msk.f32.vlgmr.msra.gmra.mxu0 %vm72_vm0, %v414_v1  ;;  %1236 = vmatmul.msk.f32.vlgmr.msra.gmra.mxu1 %vm72_vm0, %v414_v1 }
  0xf2   :  { %1237 = vmatmul.msk.f32.vlgmr.msra.gmra.mxu2 %vm72_vm0, %v414_v1  ;;  %1238 = vmatmul.msk.f32.vlgmr.msra.gmra.mxu3 %vm72_vm0, %v414_v1 }
  0xf3   :  { %640 = vmatpush.msra.mxu0 %v1483_v17  ;;  %665 = vmatpush.msra.mxu1 %v1485_v18 }
  0xf4   :  { %690 = vmatpush.msra.mxu2 %v1487_v19  ;;  %712 = vmatpush.msra.mxu3 %v1491_v20 }
  0xf5   :  { %641 = vmatpush.msra.mxu0 %v1493_v21  ;;  %666 = vmatpush.msra.mxu1 %v1497_v22 }
  0xf6   :  { %691 = vmatpush.msra.mxu2 %v1499_v23  ;;  %713 = vmatpush.msra.mxu3 %v1501_v24 }
  0xf7   :  { %642 = vmatpush.msra.mxu0 %v1505_v25  ;;  %667 = vmatpush.msra.mxu1 %v1507_v26 }
  0xf8   :  { %692 = vmatpush.msra.mxu2 %v1513_v27  ;;  %714 = vmatpush.msra.mxu3 %v1515_v28 }
  0xf9   :  { %643 = vmatpush.msra.mxu0 %v1537_v31  ;;  %668 = vmatpush.msra.mxu1 %v1539_v32 }
  0xfa   :  { %693 = vmatpush.msra.mxu2 %v1541_v33  ;;  %715 = vmatpush.msra.mxu3 %v1545_v34 }
 0x16e   :  { %v435_v30 = vpop.f32.mrf.mxu0  ;;  %v460_v41 = vpop.f32.mrf.mxu1 }
 0x16f   :  { %v438_v42 = vadd.f32 %v435_v30, %v1626_v49  ;;  %v463_v43 = vadd.f32 %v460_v41, %v1628_v50 }
 0x171   :  { %v439_v44 = vmul.f32 0.5, %v438_v42  ;;  %v464_v2 = vmul.f32 0.5, %v463_v43 }
 0x173   :  { %1285 = vtanh.f32 %v439_v44 }
 0x174   :  { %1287 = vtanh.f32 %v464_v2 }
 0x175   :  { %v485_v13 = vpop.f32.mrf.mxu2  ;;  %v507_v14 = vpop.f32.mrf.mxu3 }
 0x176   :  { %v488_v9 = vadd.f32 %v485_v13, %v1641_v55  ;;  %v510_v10 = vadd.f32 %v507_v14, %v1644_v56 }
 0x178   :  { %1289 = vtanh.f32 %v488_v9  ;;  %v511_v37 = vmul.f32 0.5, %v510_v10 }
 0x179   :  { %v1286_v38 = vpop.eup %1285 }
 0x17a   :  { %v1288_v47 = vpop.eup %1287  ;;  %v441_v48 = vmul.f32 0.5, %v1286_v38  ;;  %1291 = vtanh.f32 %v511_v37 }
 0x17b   :  { %v466_v45 = vmul.f32 0.5, %v1288_v47 }
 0x17c   :  { %v442_v49 = vadd.f32 0.5, %v441_v48 }
 0x17d   :  { %v467_v51 = vadd.f32 0.5, %v466_v45 }
 0x17e   :  { %v1290_v50 = vpop.eup %1289 }
 0x17f   :  { %v515_v46 = vmul.f32 %v467_v51, %v412_v57  ;;  %v516_v52 = vmul.f32 %v1290_v50, %v442_v49 }
 0x180   :  { %v1292_v58 = vpop.eup %1291 }
 0x181   :  { %v517_v1 = vadd.f32 %v516_v52, %v515_v46  ;;  %v513_v30 = vmul.f32 0.5, %v1292_v58 }
 0x183   :  { %1293 = vtanh.f32 %v517_v1  ;;  %v514_v41 = vadd.f32 0.5, %v513_v30 }
 0x189   :  { %v1294_v55 = vpop.eup %1293 }
 0x18a   :  { %v519_v42 = vmul.f32 %v1294_v55, %v514_v41 }
 0x18c   :  { %1239 = vmatmul.msk.f32.vlgmr.msrb.gmra.mxu0 %vm72_vm0, %v519_v42  ;;  %1240 = vmatmul.msk.f32.vlgmr.msrb.gmra.mxu1 %vm72_vm0, %v519_v42 }
 0x18d   :  { %1241 = vmatmul.msk.f32.vlgmr.msrb.gmra.mxu2 %vm72_vm0, %v519_v42  ;;  %1242 = vmatmul.msk.f32.vlgmr.msrb.gmra.mxu3 %vm72_vm0, %v519_v42 }
 0x18e   :  { %745 = vmatpush.msrb.mxu0 %v1483_v17  ;;  %770 = vmatpush.msrb.mxu1 %v1485_v18 }
 0x18f   :  { %795 = vmatpush.msrb.mxu2 %v1487_v19  ;;  %817 = vmatpush.msrb.mxu3 %v1491_v20 }
 0x190   :  { %746 = vmatpush.msrb.mxu0 %v1493_v21  ;;  %771 = vmatpush.msrb.mxu1 %v1497_v22 }
 0x191   :  { %796 = vmatpush.msrb.mxu2 %v1499_v23  ;;  %818 = vmatpush.msrb.mxu3 %v1501_v24 }
 0x192   :  { %747 = vmatpush.msrb.mxu0 %v1505_v25  ;;  %772 = vmatpush.msrb.mxu1 %v1507_v26 }
 0x193   :  { %797 = vmatpush.msrb.mxu2 %v1513_v27  ;;  %819 = vmatpush.msrb.mxu3 %v1515_v28 }
 0x194   :  { %748 = vmatpush.msrb.mxu0 %v1537_v31  ;;  %773 = vmatpush.msrb.mxu1 %v1539_v32 }
 0x195   :  { %798 = vmatpush.msrb.mxu2 %v1541_v33  ;;  %820 = vmatpush.msrb.mxu3 %v1545_v34 }
 0x209   :  { %v540_v56 = vpop.f32.mrf.mxu0  ;;  %v565_v57 = vpop.f32.mrf.mxu1 }
 0x20a   :  { %v543_v43 = vadd.f32 %v540_v56, %v1646_v59  ;;  %v568_v44 = vadd.f32 %v565_v57, %v1648_v60 }
 0x20c   :  { %v544_v2 = vmul.f32 0.5, %v543_v43  ;;  %v569_v13 = vmul.f32 0.5, %v568_v44 }
 0x20e   :  { %1295 = vtanh.f32 %v544_v2 }
 0x20f   :  { %1297 = vtanh.f32 %v569_v13 }
 0x210   :  { %v590_v14 = vpop.f32.mrf.mxu2  ;;  %v612_v9 = vpop.f32.mrf.mxu3 }
 0x211   :  { %v593_v10 = vadd.f32 %v590_v14, %v1651_v63  ;;  %v615_v37 = vadd.f32 %v612_v9, %v1654_v0 }
 0x213   :  { %1299 = vtanh.f32 %v593_v10  ;;  %v616_v38 = vmul.f32 0.5, %v615_v37 }
 0x214   :  { %v1296_v47 = vpop.eup %1295 }
 0x215   :  { %v1298_v48 = vpop.eup %1297  ;;  %v546_v45 = vmul.f32 0.5, %v1296_v47  ;;  %1301 = vtanh.f32 %v616_v38 }
 0x216   :  { %v571_v49 = vmul.f32 0.5, %v1298_v48 }
 0x217   :  { %v547_v59 = vadd.f32 0.5, %v546_v45 }
 0x218   :  { %v572_v51 = vadd.f32 0.5, %v571_v49 }
 0x219   :  { %v1300_v60 = vpop.eup %1299 }
 0x21a   :  { %v620_v50 = vmul.f32 %v572_v51, %v517_v1  ;;  %v621_v46 = vmul.f32 %v1300_v60, %v547_v59 }
 0x21b   :  { %v1302_v52 = vpop.eup %1301 }
 0x21c   :  { %v622_v58 = vadd.f32 %v621_v46, %v620_v50  ;;  %v618_v30 = vmul.f32 0.5, %v1302_v52 }
 0x21e   :  { %1303 = vtanh.f32 %v622_v58  ;;  %v619_v41 = vadd.f32 0.5, %v618_v30 }
 0x224   :  { %v1304_v63 = vpop.eup %1303 }
 0x225   :  { %v624_v55 = vmul.f32 %v1304_v63, %v619_v41 }
 0x227   :  { %1243 = vmatmul.msk.f32.vlgmr.msra.gmra.mxu0 %vm72_vm0, %v624_v55  ;;  %1244 = vmatmul.msk.f32.vlgmr.msra.gmra.mxu1 %vm72_vm0, %v624_v55 }
 0x228   :  { %1245 = vmatmul.msk.f32.vlgmr.msra.gmra.mxu2 %vm72_vm0, %v624_v55  ;;  %1246 = vmatmul.msk.f32.vlgmr.msra.gmra.mxu3 %vm72_vm0, %v624_v55 }
 0x229   :  { %850 = vmatpush.msra.mxu0 %v1483_v17  ;;  %875 = vmatpush.msra.mxu1 %v1485_v18 }
 0x22a   :  { %900 = vmatpush.msra.mxu2 %v1487_v19  ;;  %922 = vmatpush.msra.mxu3 %v1491_v20 }
 0x22b   :  { %851 = vmatpush.msra.mxu0 %v1493_v21  ;;  %876 = vmatpush.msra.mxu1 %v1497_v22 }
 0x22c   :  { %901 = vmatpush.msra.mxu2 %v1499_v23  ;;  %923 = vmatpush.msra.mxu3 %v1501_v24 }
 0x22d   :  { %852 = vmatpush.msra.mxu0 %v1505_v25  ;;  %877 = vmatpush.msra.mxu1 %v1507_v26 }
 0x22e   :  { %902 = vmatpush.msra.mxu2 %v1513_v27  ;;  %924 = vmatpush.msra.mxu3 %v1515_v28 }
 0x22f   :  { %853 = vmatpush.msra.mxu0 %v1537_v31  ;;  %878 = vmatpush.msra.mxu1 %v1539_v32 }
 0x230   :  { %903 = vmatpush.msra.mxu2 %v1541_v33  ;;  %925 = vmatpush.msra.mxu3 %v1545_v34 }
 0x2a4   :  { %v645_v0 = vpop.f32.mrf.mxu0  ;;  %v670_v1 = vpop.f32.mrf.mxu1 }
 0x2a5   :  { %v648_v42 = vadd.f32 %v645_v0, %v1656_v3  ;;  %v673_v56 = vadd.f32 %v670_v1, %v1658_v4 }
 0x2a7   :  { %v649_v57 = vmul.f32 0.5, %v648_v42  ;;  %v674_v43 = vmul.f32 0.5, %v673_v56 }
 0x2a9   :  { %1305 = vtanh.f32 %v649_v57 }
 0x2aa   :  { %1307 = vtanh.f32 %v674_v43 }
 0x2ab   :  { %v695_v44 = vpop.f32.mrf.mxu2  ;;  %v717_v2 = vpop.f32.mrf.mxu3 }
 0x2ac   :  { %v698_v13 = vadd.f32 %v695_v44, %v1661_v7  ;;  %v720_v14 = vadd.f32 %v717_v2, %v1664_v8 }
 0x2ae   :  { %1309 = vtanh.f32 %v698_v13  ;;  %v721_v9 = vmul.f32 0.5, %v720_v14 }
 0x2af   :  { %v1306_v10 = vpop.eup %1305 }
 0x2b0   :  { %v1308_v37 = vpop.eup %1307  ;;  %v651_v38 = vmul.f32 0.5, %v1306_v10  ;;  %1311 = vtanh.f32 %v721_v9 }
 0x2b1   :  { %v676_v47 = vmul.f32 0.5, %v1308_v37 }
 0x2b2   :  { %v652_v3 = vadd.f32 0.5, %v651_v38 }
 0x2b3   :  { %v677_v48 = vadd.f32 0.5, %v676_v47 }
 0x2b4   :  { %v1310_v4 = vpop.eup %1309 }
 0x2b5   :  { %v725_v45 = vmul.f32 %v677_v48, %v622_v58  ;;  %v726_v49 = vmul.f32 %v1310_v4, %v652_v3 }
 0x2b6   :  { %v1312_v59 = vpop.eup %1311 }
 0x2b7   :  { %v727_v51 = vadd.f32 %v726_v49, %v725_v45  ;;  %v723_v60 = vmul.f32 0.5, %v1312_v59 }
 0x2b9   :  { %1313 = vtanh.f32 %v727_v51  ;;  %v724_v50 = vadd.f32 0.5, %v723_v60 }
 0x2bf   :  { %v1314_v7 = vpop.eup %1313 }
 0x2c0   :  { %v729_v46 = vmul.f32 %v1314_v7, %v724_v50 }
 0x2c2   :  { %1247 = vmatmul.msk.f32.vlgmr.msrb.gmra.mxu0 %vm72_vm0, %v729_v46  ;;  %1248 = vmatmul.msk.f32.vlgmr.msrb.gmra.mxu1 %vm72_vm0, %v729_v46 }
 0x2c3   :  { %1249 = vmatmul.msk.f32.vlgmr.msrb.gmra.mxu2 %vm72_vm0, %v729_v46  ;;  %1250 = vmatmul.msk.f32.vlgmr.msrb.gmra.mxu3 %vm72_vm0, %v729_v46 }
 0x2c4   :  { %955 = vmatpush.msrb.mxu0 %v1483_v17  ;;  %980 = vmatpush.msrb.mxu1 %v1485_v18 }
 0x2c5   :  { %1005 = vmatpush.msrb.mxu2 %v1487_v19  ;;  %1027 = vmatpush.msrb.mxu3 %v1491_v20 }
 0x2c6   :  { %956 = vmatpush.msrb.mxu0 %v1493_v21  ;;  %981 = vmatpush.msrb.mxu1 %v1497_v22 }
 0x2c7   :  { %1006 = vmatpush.msrb.mxu2 %v1499_v23  ;;  %1028 = vmatpush.msrb.mxu3 %v1501_v24 }
 0x2c8   :  { %957 = vmatpush.msrb.mxu0 %v1505_v25  ;;  %982 = vmatpush.msrb.mxu1 %v1507_v26 }
 0x2c9   :  { %1007 = vmatpush.msrb.mxu2 %v1513_v27  ;;  %1029 = vmatpush.msrb.mxu3 %v1515_v28 }
 0x2ca   :  { %958 = vmatpush.msrb.mxu0 %v1537_v31  ;;  %983 = vmatpush.msrb.mxu1 %v1539_v32 }
 0x2cb   :  { %1008 = vmatpush.msrb.mxu2 %v1541_v33  ;;  %1030 = vmatpush.msrb.mxu3 %v1545_v34 }
 0x33f   :  { %v750_v8 = vpop.f32.mrf.mxu0  ;;  %v775_v52 = vpop.f32.mrf.mxu1 }
 0x340   :  { %v753_v58 = vadd.f32 %v750_v8, %v1666_v11  ;;  %v778_v30 = vadd.f32 %v775_v52, %v1668_v12 }
 0x342   :  { %v754_v41 = vmul.f32 0.5, %v753_v58  ;;  %v779_v63 = vmul.f32 0.5, %v778_v30 }
 0x344   :  { %1315 = vtanh.f32 %v754_v41 }
 0x345   :  { %1317 = vtanh.f32 %v779_v63 }
 0x346   :  { %v800_v55 = vpop.f32.mrf.mxu2  ;;  %v822_v0 = vpop.f32.mrf.mxu3 }
 0x347   :  { %v803_v1 = vadd.f32 %v800_v55, %v1671_v15  ;;  %v825_v42 = vadd.f32 %v822_v0, %v1674_v16 }
 0x349   :  { %1319 = vtanh.f32 %v803_v1  ;;  %v826_v56 = vmul.f32 0.5, %v825_v42 }
 0x34a   :  { %v1316_v57 = vpop.eup %1315 }
 0x34b   :  { %v1318_v43 = vpop.eup %1317  ;;  %v756_v44 = vmul.f32 0.5, %v1316_v57  ;;  %1321 = vtanh.f32 %v826_v56 }
 0x34c   :  { %v781_v2 = vmul.f32 0.5, %v1318_v43 }
 0x34d   :  { %v757_v11 = vadd.f32 0.5, %v756_v44 }
 0x34e   :  { %v782_v13 = vadd.f32 0.5, %v781_v2 }
 0x34f   :  { %v1320_v12 = vpop.eup %1319 }
 0x350   :  { %v830_v14 = vmul.f32 %v782_v13, %v727_v51  ;;  %v831_v9 = vmul.f32 %v1320_v12, %v757_v11 }
 0x351   :  { %v1322_v10 = vpop.eup %1321 }
 0x352   :  { %v832_v37 = vadd.f32 %v831_v9, %v830_v14  ;;  %v828_v38 = vmul.f32 0.5, %v1322_v10  ;;  %v1152_v14 = vld [vmem:[%s1870_s4 + $0x10] sm:$0xff]  ;;  %v1151_v9 = vld [vmem:[%s1870_s4 + $0x8] sm:$0xff]  ;;  %v1150_v10 = vld [vmem:[%s1870_s4] sm:$0xff] }
 0x354   :  { %1323 = vtanh.f32 %v832_v37  ;;  %v829_v47 = vadd.f32 0.5, %v828_v38 }
 0x35a   :  { %v1324_v15 = vpop.eup %1323 }
 0x35b   :  { %v834_v3 = vmul.f32 %v1324_v15, %v829_v47 }
 0x35d   :  { %1251 = vmatmul.msk.f32.vlgmr.msra.gmra.mxu0 %vm72_vm0, %v834_v3  ;;  %1252 = vmatmul.msk.f32.vlgmr.msra.gmra.mxu1 %vm72_vm0, %v834_v3 }
 0x35e   :  { %1253 = vmatmul.msk.f32.vlgmr.msra.gmra.mxu2 %vm72_vm0, %v834_v3  ;;  %1254 = vmatmul.msk.f32.vlgmr.msra.gmra.mxu3 %vm72_vm0, %v834_v3 }
 0x35f   :  { %1060 = vmatpush.msra.mxu0 %v1483_v17  ;;  %1085 = vmatpush.msra.mxu1 %v1485_v18 }
 0x360   :  { %1110 = vmatpush.msra.mxu2 %v1487_v19  ;;  %1132 = vmatpush.msra.mxu3 %v1491_v20 }
 0x361   :  { %1061 = vmatpush.msra.mxu0 %v1493_v21  ;;  %1086 = vmatpush.msra.mxu1 %v1497_v22 }
 0x362   :  { %1111 = vmatpush.msra.mxu2 %v1499_v23  ;;  %1133 = vmatpush.msra.mxu3 %v1501_v24 }
 0x363   :  { %1062 = vmatpush.msra.mxu0 %v1505_v25  ;;  %1087 = vmatpush.msra.mxu1 %v1507_v26 }
 0x364   :  { %1112 = vmatpush.msra.mxu2 %v1513_v27  ;;  %1134 = vmatpush.msra.mxu3 %v1515_v28 }
 0x365   :  { %1063 = vmatpush.msra.mxu0 %v1537_v31  ;;  %1088 = vmatpush.msra.mxu1 %v1539_v32 }
 0x366   :  { %1113 = vmatpush.msra.mxu2 %v1541_v33  ;;  %1135 = vmatpush.msra.mxu3 %v1545_v34 }
 0x3da   :  { %v855_v17 = vpop.f32.mrf.mxu0  ;;  %v880_v18 = vpop.f32.mrf.mxu1 }
 0x3db   :  { %v858_v19 = vadd.f32 %v855_v17, %v1676_v35  ;;  %v883_v20 = vadd.f32 %v880_v18, %v1678_v36 }
 0x3dd   :  { %v859_v21 = vmul.f32 0.5, %v858_v19  ;;  %v884_v22 = vmul.f32 0.5, %v883_v20 }
 0x3df   :  { %1325 = vtanh.f32 %v859_v21  ;;  %v1874_v21 = vld [vmem:[#allocation11_spill] sm:$0xff] }
 0x3e0   :  { %1327 = vtanh.f32 %v884_v22 }
 0x3e1   :  { %v905_v23 = vpop.f32.mrf.mxu2  ;;  %v927_v24 = vpop.f32.mrf.mxu3 }
 0x3e2   :  { %v908_v25 = vadd.f32 %v905_v23, %v1681_v39  ;;  %v930_v26 = vadd.f32 %v927_v24, %v1684_v40 }
 0x3e4   :  { %1329 = vtanh.f32 %v908_v25  ;;  %v931_v27 = vmul.f32 0.5, %v930_v26 }
 0x3e5   :  { %v1326_v28 = vpop.eup %1325 }
 0x3e6   :  { %v1328_v31 = vpop.eup %1327  ;;  %v861_v32 = vmul.f32 0.5, %v1326_v28  ;;  %1331 = vtanh.f32 %v931_v27 }
 0x3e7   :  { %v886_v33 = vmul.f32 0.5, %v1328_v31 }
 0x3e8   :  { %v862_v34 = vadd.f32 0.5, %v861_v32 }
 0x3e9   :  { %v887_v16 = vadd.f32 0.5, %v886_v33 }
 0x3ea   :  { %v1330_v35 = vpop.eup %1329 }
 0x3eb   :  { %v935_v36 = vmul.f32 %v887_v16, %v832_v37  ;;  %v936_v48 = vmul.f32 %v1330_v35, %v862_v34 }
 0x3ec   :  { %v1332_v4 = vpop.eup %1331 }
 0x3ed   :  { %v937_v45 = vadd.f32 %v936_v48, %v935_v36  ;;  %v933_v49 = vmul.f32 0.5, %v1332_v4  ;;  %v1274_v48 = vld [vmem:[%s1871_s5] ss:$0 sm:$0xff] }
 0x3ef   :  { %1333 = vtanh.f32 %v937_v45  ;;  %v934_v59 = vadd.f32 0.5, %v933_v49 }
 0x3f5   :  { %v1334_v39 = vpop.eup %1333 }
 0x3f6   :  { %v939_v51 = vmul.f32 %v1334_v39, %v934_v59 }
 0x3f8   :  { %1255 = vmatmul.msk.f32.vlgmr.msrb.gmra.mxu0 %vm72_vm0, %v939_v51  ;;  %1256 = vmatmul.msk.f32.vlgmr.msrb.gmra.mxu1 %vm72_vm0, %v939_v51 }
 0x3f9   :  { %1257 = vmatmul.msk.f32.vlgmr.msrb.gmra.mxu2 %vm72_vm0, %v939_v51  ;;  %1258 = vmatmul.msk.f32.vlgmr.msrb.gmra.mxu3 %vm72_vm0, %v939_v51 }
 0x475   :  { %v960_v40 = vpop.f32.mrf.mxu0  ;;  %v985_v60 = vpop.f32.mrf.mxu1 }
 0x476   :  { %v963_v50 = vadd.f32 %v960_v40, %v1686_v53  ;;  %v988_v7 = vadd.f32 %v985_v60, %v1688_v54 }
 0x478   :  { %v964_v46 = vmul.f32 0.5, %v963_v50  ;;  %v989_v8 = vmul.f32 0.5, %v988_v7 }
 0x47a   :  { %1335 = vtanh.f32 %v964_v46 }
 0x47b   :  { %1337 = vtanh.f32 %v989_v8 }
 0x47c   :  { %v1010_v52 = vpop.f32.mrf.mxu2  ;;  %v1032_v58 = vpop.f32.mrf.mxu3 }
 0x47d   :  { %v1013_v30 = vadd.f32 %v1010_v52, %v1691_v61  ;;  %v1035_v41 = vadd.f32 %v1032_v58, %v1694_v62  ;;  %v1153_v62 = vld [vmem:[%s1870_s4 + $0x18] sm:$0xff] }
 0x47e   :  { %1173 = vmatpush.msrb.mxu0 %v1153_v62 }
 0x47f   :  { %1339 = vtanh.f32 %v1013_v30  ;;  %v1036_v63 = vmul.f32 0.5, %v1035_v41 }
 0x480   :  { %v1336_v55 = vpop.eup %1335  ;;  %1174 = vmatpush.msrb.mxu0 %v1152_v14 }
 0x481   :  { %v1338_v0 = vpop.eup %1337  ;;  %v966_v1 = vmul.f32 0.5, %v1336_v55  ;;  %1341 = vtanh.f32 %v1036_v63 }
 0x482   :  { %v991_v42 = vmul.f32 0.5, %v1338_v0  ;;  %1175 = vmatpush.msrb.mxu0 %v1151_v9 }
 0x483   :  { %v967_v53 = vadd.f32 0.5, %v966_v1 }
 0x484   :  { %v992_v56 = vadd.f32 0.5, %v991_v42  ;;  %1176 = vmatpush.msrb.mxu0 %v1150_v10 }
 0x485   :  { %v1340_v54 = vpop.eup %1339 }
 0x486   :  { %v1040_v57 = vmul.f32 %v992_v56, %v937_v45  ;;  %v1041_v43 = vmul.f32 %v1340_v54, %v967_v53 }
 0x487   :  { %v1342_v44 = vpop.eup %1341 }
 0x488   :  { %v1042_v2 = vadd.f32 %v1041_v43, %v1040_v57  ;;  %v1038_v11 = vmul.f32 0.5, %v1342_v44 }
 0x48a   :  { %1343 = vtanh.f32 %v1042_v2  ;;  %v1039_v13 = vadd.f32 0.5, %v1038_v11 }
 0x490   :  { %v1344_v61 = vpop.eup %1343 }
 0x491   :  { %v1044_v12 = vmul.f32 %v1344_v61, %v1039_v13 }
 0x493   :  { %1259 = vmatmul.msk.f32.vlgmr.msra.gmra.mxu0 %vm72_vm0, %v1044_v12  ;;  %1260 = vmatmul.msk.f32.vlgmr.msra.gmra.mxu1 %vm72_vm0, %v1044_v12 }
 0x494   :  { %1261 = vmatmul.msk.f32.vlgmr.msra.gmra.mxu2 %vm72_vm0, %v1044_v12  ;;  %1262 = vmatmul.msk.f32.vlgmr.msra.gmra.mxu3 %vm72_vm0, %v1044_v12 }
 0x510   :  { %v1065_v37 = vpop.f32.mrf.mxu0  ;;  %v1090_v38 = vpop.f32.mrf.mxu1 }
 0x511   :  { %v1068_v47 = vadd.f32 %v1065_v37, %v1696_v5  ;;  %v1093_v15 = vadd.f32 %v1090_v38, %v1698_v6 }
 0x513   :  { %v1069_v3 = vmul.f32 0.5, %v1068_v47  ;;  %v1094_v17 = vmul.f32 0.5, %v1093_v15 }
 0x515   :  { %1345 = vtanh.f32 %v1069_v3 }
 0x516   :  { %1347 = vtanh.f32 %v1094_v17 }
 0x517   :  { %v1115_v18 = vpop.f32.mrf.mxu2  ;;  %v1137_v19 = vpop.f32.mrf.mxu3 }
 0x518   :  { %v1118_v20 = vadd.f32 %v1115_v18, %v1701_v29  ;;  %v1140_v22 = vadd.f32 %v1137_v19, %v1874_v21 }
 0x51a   :  { %1349 = vtanh.f32 %v1118_v20  ;;  %v1141_v23 = vmul.f32 0.5, %v1140_v22 }
 0x51b   :  { %v1346_v24 = vpop.eup %1345 }
 0x51c   :  { %v1348_v25 = vpop.eup %1347  ;;  %v1071_v26 = vmul.f32 0.5, %v1346_v24  ;;  %1351 = vtanh.f32 %v1141_v23 }
 0x51d   :  { %v1096_v27 = vmul.f32 0.5, %v1348_v25 }
 0x51e   :  { %v1072_v5 = vadd.f32 0.5, %v1071_v26 }
 0x51f   :  { %v1097_v28 = vadd.f32 0.5, %v1096_v27 }
 0x520   :  { %v1350_v6 = vpop.eup %1349 }
 0x521   :  { %v1145_v31 = vmul.f32 %v1097_v28, %v1042_v2  ;;  %v1146_v32 = vmul.f32 %v1350_v6, %v1072_v5 }
 0x522   :  { %v1352_v33 = vpop.eup %1351 }
 0x523   :  { %v1147_v34 = vadd.f32 %v1146_v32, %v1145_v31  ;;  %v1143_v16 = vmul.f32 0.5, %v1352_v33 }
 0x525   :  { %1353 = vtanh.f32 %v1147_v34  ;;  %v1144_v35 = vadd.f32 0.5, %v1143_v16 }
 0x52b   :  { %v1354_v29 = vpop.eup %1353 }
 0x52c   :  { %v1149_v36 = vmul.f32 %v1354_v29, %v1144_v35 }
 0x52e   :  { %1263 = vmatmul.msk.f32.vlgmr.msrb.gmra.mxu0 %vm72_vm0, %v1149_v36 }
 0x5ab   :  { %v1178_v4 = vpop.f32.mrf.mxu0 }
 0x5ac   :  { %v1179_v45 = vadd.f32 %v1274_v48, %v1178_v4 }
 0x5ae   :  { %1181 = vst.msk [vmem:[#allocation7] sm:$0xff] %vm72_vm0, %v1179_v45 }
 0x5af   :  { %1192 = dma.vmem_to_hbm [thread:$0]  %s1188_s13, 128, %s1190_s16, [#allocation4]  }
 0x5b0   :  { %1431 = dma.done.wait [#allocation4], 128  }
 0x5b1   :  { %1432 = vsyncadd [#allocation4], 4294967168 }
 0x5b2   :  { %1197 = vsyncpa [#allocation3], 1 }
 0x5b3   :  { %1198 = vsyncpa [#allocation6], 1 }
 0x5b4   :  { %1199 = vsyncpa [#allocation4], 1 }

</bundles_post_ra>
